<compile_context>
chip_gen: v7x
topology: tpu7x:2x2x1
jax: 0.10.0
libtpu: 0.0.40
codegen_flags: <defaults>
</compile_context>

<pallas_src>
import numpy as np
import jax
import jax.numpy as jnp
from jax.experimental import pallas as pl
from jax.experimental.pallas import tpu as pltpu


# ----------------------------------------------------------------------------
# Adaptive average pooling expressed as a linear operator (matches torch's
# AdaptiveAvgPool2d per axis: start = floor(i*I/O), end = ceil((i+1)*I/O)).
# ----------------------------------------------------------------------------
def _adaptive_pool_matrix(in_size: int, out_size: int) -> np.ndarray:
    mat = np.zeros((out_size, in_size), dtype=np.float32)
    for i in range(out_size):
        start = (i * in_size) // out_size
        end = -((-(i + 1) * in_size) // out_size)  # ceil((i+1)*I/O)
        mat[i, start:end] = 1.0 / (end - start)
    return mat


# ----------------------------------------------------------------------------
# Kernel 1: pool+crop+pool for GROUP images per grid step.
#   face_g = A_h @ x_g @ A_w^T, emitted in bf16.
# ----------------------------------------------------------------------------
GROUP = 8  # images per grid step


def _preproc_kernel(ah_ref, awt_ref, x_ref, o_ref):
    ah = ah_ref[...]      # (112, H)  resident across the whole grid
    awt = awt_ref[...]    # (W, 112)
    g_total = x_ref.shape[0]
    for g in range(g_total):  # static unroll over the image group
        y = jnp.dot(x_ref[g], awt, preferred_element_type=jnp.float32)      # (H, 112)
        face = jnp.dot(ah, y, preferred_element_type=jnp.float32)           # (112, 112)
        o_ref[g] = face.astype(o_ref.dtype)


def _adaptive_crop_pool(x, a_h, a_w):
    """x: (N, C, H, W) f32 -> (N, C, 112, 112) bf16."""
    N, C, H, W = x.shape
    B = N * C
    Bp = ((B + GROUP - 1) // GROUP) * GROUP
    xb = x.reshape(B, H, W)
    if Bp != B:
        xb = jnp.pad(xb, ((0, Bp - B), (0, 0), (0, 0)))

    a_h_j = jnp.asarray(a_h, dtype=jnp.float32)     # (112, H)
    a_wt_j = jnp.asarray(a_w.T, dtype=jnp.float32)  # (W, 112)

    out = pl.pallas_call(
        _preproc_kernel,
        out_shape=jax.ShapeDtypeStruct((Bp, 112, 112), jnp.bfloat16),
        grid_spec=pltpu.PrefetchScalarGridSpec(
            num_scalar_prefetch=0,
            grid=(Bp // GROUP,),
            in_specs=[
                pl.BlockSpec((112, H), lambda b: (0, 0)),
                pl.BlockSpec((W, 112), lambda b: (0, 0)),
                pl.BlockSpec((GROUP, H, W), lambda b: (b, 0, 0)),
            ],
            out_specs=pl.BlockSpec((GROUP, 112, 112), lambda b: (b, 0, 0)),
        ),
        compiler_params=pltpu.CompilerParams(dimension_semantics=("parallel",)),
    )(a_h_j, a_wt_j, xb)
    return out[:B].reshape(N, C, 112, 112)


# ----------------------------------------------------------------------------
# Kernel 2: embedding matmul — large bf16 K tiles, f32 accumulation directly
# into the resident output block, output columns split for megacore (v7x).
# ----------------------------------------------------------------------------
def _embed_kernel(x_ref, w_ref, o_ref):
    @pl.when(pl.program_id(1) == 0)
    def _():
        o_ref[...] = jnp.zeros_like(o_ref)

    o_ref[...] += jnp.dot(x_ref[...], w_ref[...], preferred_element_type=jnp.float32)


def _pick_k_tile(K, col, elem_bytes=2, budget_bytes=8 * 1024 * 1024):
    """Largest multiple of 128 that divides K with a (tk, col) weight tile <= budget.

    Never falls back to tk=K unless it also satisfies the budget; since K is always
    a multiple of 128 here, tk=128 is always a valid floor (no OOM-sized blocks).
    """
    assert K % 128 == 0, "K must be a multiple of 128"
    cap = max(128, (budget_bytes // (col * elem_bytes)) // 128 * 128)
    best = 128
    tk = 128
    while tk <= min(K, cap):
        if K % tk == 0:
            best = tk
        tk += 128
    return best


def _embed(xf, w_embed):
    """xf: (N, K) -> (N, 512) f32 (un-normalized) via bf16 weight streaming."""
    xf = xf.astype(jnp.bfloat16)
    w = w_embed.astype(jnp.bfloat16)
    N, K = xf.shape
    E = w.shape[1]
    col = 256 if E % 256 == 0 else E          # 2 column blocks -> both v7x TCs stream weights
    nj = E // col
    tk = _pick_k_tile(K, col)                 # e.g. K=37632 -> tk=12544 (6.4 MB bf16 tile)
    nk = K // tk

    return pl.pallas_call(
        _embed_kernel,
        out_shape=jax.ShapeDtypeStruct((N, E), jnp.float32),
        grid_spec=pltpu.PrefetchScalarGridSpec(
            num_scalar_prefetch=0,
            grid=(nj, nk),
            in_specs=[
                pl.BlockSpec((N, tk), lambda j, k: (0, k)),
                pl.BlockSpec((tk, col), lambda j, k: (k, j)),
            ],
            out_specs=pl.BlockSpec((N, col), lambda j, k: (0, j)),
        ),
        compiler_params=pltpu.CompilerParams(
            dimension_semantics=("parallel", "arbitrary"),
            vmem_limit_bytes=48 * 1024 * 1024,
        ),
    )(xf, w)


# ----------------------------------------------------------------------------
# Kernel 3: L2 normalization (kept out of the matmul kernel because the norm
# couples the two column blocks that are split across TensorCores).
# ----------------------------------------------------------------------------
def _l2norm_kernel(x_ref, o_ref):
    x = x_ref[...]
    norm = jnp.sqrt(jnp.sum(x * x, axis=-1, keepdims=True))
    o_ref[...] = x / jnp.maximum(norm, 1e-12)   # matches torch F.normalize clamp


def _l2_normalize(emb):
    N, E = emb.shape
    return pl.pallas_call(
        _l2norm_kernel,
        out_shape=jax.ShapeDtypeStruct((N, E), jnp.float32),
        grid_spec=pltpu.PrefetchScalarGridSpec(
            num_scalar_prefetch=0,
            grid=(1,),
            in_specs=[pl.BlockSpec((N, E), lambda i: (0, 0))],
            out_specs=pl.BlockSpec((N, E), lambda i: (0, 0)),
        ),
    )(emb)


# ----------------------------------------------------------------------------
# ArcFace.forward
# ----------------------------------------------------------------------------
def arcface_forward(x, w_embed):
    N, C, H, W = x.shape

    # extract_feats: pool to 256 iff x.shape[2] != 256 (matches PyTorch check).
    if H != 256:
        p_h = _adaptive_pool_matrix(H, 256)
        p_w = _adaptive_pool_matrix(W, 256)
    else:
        p_h = np.eye(H, dtype=np.float32)
        p_w = np.eye(W, dtype=np.float32)

    # crop [:, :, 35:223, 32:220]  then  AdaptiveAvgPool2d((112, 112)).
    p2 = _adaptive_pool_matrix(188, 112)
    a_h = p2 @ p_h[35:223]   # (112, H)
    a_w = p2 @ p_w[32:220]   # (112, W)

    faces = _adaptive_crop_pool(x, a_h, a_w)          # (N, C, 112, 112) bf16
    xf = faces.reshape(N, C * 112 * 112)              # flat bf16 features
    emb = _embed(xf, w_embed)                         # (N, 512) f32 (un-normalized)
    return _l2_normalize(emb)                         # (N, 512) f32


if __name__ == "__main__":
    key = jax.random.PRNGKey(0)
    kx, kw = jax.random.split(key)

    # Small NCHW input (H != 256 exercises the first adaptive pool branch).
    N, C, H, W = 2, 3, 64, 64
    x = jax.random.normal(kx, (N, C, H, W), dtype=jnp.float32)

    # Deterministic synthetic embedding weight (bf16): (C*112*112, 512).
    K = C * 112 * 112
    w_embed = (0.01 * jax.random.normal(kw, (K, 512), dtype=jnp.float32)).astype(jnp.bfloat16)

    out = arcface_forward(x, w_embed)
    jax.block_until_ready(out)
    assert out.shape == (N, 512) and out.dtype == jnp.float32
    print("KERNEL_OK")
</pallas_src>

<mosaic_0001>
module attributes {stable_mosaic.version = 11 : i64} {
  func.func @_preproc_kernel(%arg0: i32, %arg1: memref<112x64xf32, #tpu.memory_space<vmem>>, %arg2: memref<64x112xf32, #tpu.memory_space<vmem>>, %arg3: memref<8x64x64xf32, #tpu.memory_space<vmem>>, %arg4: memref<8x112x112xbf16, #tpu.memory_space<vmem>>) attributes {dimension_semantics = [#tpu.dimension_semantics<parallel>], iteration_bounds = array<i64: 1>, scalar_prefetch = 0 : i64, scratch_operands = 0 : i64, tpu.core_type = #tpu.core_type<tc>, window_params = [{pipeline_mode = #tpu.pipeline_mode<synchronous>, transform_indices = @transform_0, window_bounds = array<i64: 112, 64>}, {pipeline_mode = #tpu.pipeline_mode<synchronous>, transform_indices = @transform_1, window_bounds = array<i64: 64, 112>}, {transform_indices = @transform_2, window_bounds = array<i64: 8, 64, 64>}, {transform_indices = @transform_3, window_bounds = array<i64: 8, 112, 112>}]} {
    %c0 = arith.constant 0 : index
    %c0_0 = arith.constant 0 : index
    %0 = vector.load %arg1[%c0, %c0_0] : memref<112x64xf32, #tpu.memory_space<vmem>>, vector<112x64xf32>
    %c0_1 = arith.constant 0 : index
    %c0_2 = arith.constant 0 : index
    %1 = vector.load %arg2[%c0_1, %c0_2] : memref<64x112xf32, #tpu.memory_space<vmem>>, vector<64x112xf32>
    %c0_3 = arith.constant 0 : index
    %c0_4 = arith.constant 0 : index
    %c0_5 = arith.constant 0 : index
    %2 = vector.load %arg3[%c0_3, %c0_4, %c0_5] : memref<8x64x64xf32, #tpu.memory_space<vmem>>, vector<1x64x64xf32>
    %3 = vector.shape_cast %2 : vector<1x64x64xf32> to vector<64x64xf32>
    %cst = arith.constant dense<0.000000e+00> : vector<64x112xf32>
    %4 = tpu.matmul %3, %1, %cst {dimension_numbers = #tpu.dot_dimension_numbers<[1], [0], [0], [1], [0, 0, 1, 1], [], []>} : vector<64x64xf32>, vector<64x112xf32>, vector<64x112xf32> -> vector<64x112xf32>
    %cst_6 = arith.constant dense<0.000000e+00> : vector<112x112xf32>
    %5 = tpu.matmul %0, %4, %cst_6 {dimension_numbers = #tpu.dot_dimension_numbers<[1], [0], [0], [1], [0, 0, 1, 1], [], []>} : vector<112x64xf32>, vector<64x112xf32>, vector<112x112xf32> -> vector<112x112xf32>
    %6 = arith.truncf %5 : vector<112x112xf32> to vector<112x112xbf16>
    %c0_7 = arith.constant 0 : index
    %c0_8 = arith.constant 0 : index
    %c0_9 = arith.constant 0 : index
    %7 = vector.load %arg4[%c0_7, %c0_8, %c0_9] : memref<8x112x112xbf16, #tpu.memory_space<vmem>>, vector<1x112x112xbf16>
    %8 = vector.shape_cast %7 : vector<1x112x112xbf16> to vector<112x112xbf16>
    %9 = vector.shape_cast %6 : vector<112x112xbf16> to vector<1x112x112xbf16>
    tpu.vector_store %arg4[%c0_7, %c0_8, %c0_9], %9 {strides = array<i32>} : memref<8x112x112xbf16, #tpu.memory_space<vmem>>, vector<1x112x112xbf16>,
    %c1 = arith.constant 1 : index
    %c0_10 = arith.constant 0 : index
    %c0_11 = arith.constant 0 : index
    %10 = vector.load %arg3[%c1, %c0_10, %c0_11] : memref<8x64x64xf32, #tpu.memory_space<vmem>>, vector<1x64x64xf32>
    %11 = vector.shape_cast %10 : vector<1x64x64xf32> to vector<64x64xf32>
    %cst_12 = arith.constant dense<0.000000e+00> : vector<64x112xf32>
    %12 = tpu.matmul %11, %1, %cst_12 {dimension_numbers = #tpu.dot_dimension_numbers<[1], [0], [0], [1], [0, 0, 1, 1], [], []>} : vector<64x64xf32>, vector<64x112xf32>, vector<64x112xf32> -> vector<64x112xf32>
    %cst_13 = arith.constant dense<0.000000e+00> : vector<112x112xf32>
    %13 = tpu.matmul %0, %12, %cst_13 {dimension_numbers = #tpu.dot_dimension_numbers<[1], [0], [0], [1], [0, 0, 1, 1], [], []>} : vector<112x64xf32>, vector<64x112xf32>, vector<112x112xf32> -> vector<112x112xf32>
    %14 = arith.truncf %13 : vector<112x112xf32> to vector<112x112xbf16>
    %c1_14 = arith.constant 1 : index
    %c0_15 = arith.constant 0 : index
    %c0_16 = arith.constant 0 : index
    %15 = vector.load %arg4[%c1_14, %c0_15, %c0_16] : memref<8x112x112xbf16, #tpu.memory_space<vmem>>, vector<1x112x112xbf16>
    %16 = vector.shape_cast %15 : vector<1x112x112xbf16> to vector<112x112xbf16>
    %17 = vector.shape_cast %14 : vector<112x112xbf16> to vector<1x112x112xbf16>
    tpu.vector_store %arg4[%c1_14, %c0_15, %c0_16], %17 {strides = array<i32>} : memref<8x112x112xbf16, #tpu.memory_space<vmem>>, vector<1x112x112xbf16>,
    %c2 = arith.constant 2 : index
    %c0_17 = arith.constant 0 : index
    %c0_18 = arith.constant 0 : index
    %18 = vector.load %arg3[%c2, %c0_17, %c0_18] : memref<8x64x64xf32, #tpu.memory_space<vmem>>, vector<1x64x64xf32>
    %19 = vector.shape_cast %18 : vector<1x64x64xf32> to vector<64x64xf32>
    %cst_19 = arith.constant dense<0.000000e+00> : vector<64x112xf32>
    %20 = tpu.matmul %19, %1, %cst_19 {dimension_numbers = #tpu.dot_dimension_numbers<[1], [0], [0], [1], [0, 0, 1, 1], [], []>} : vector<64x64xf32>, vector<64x112xf32>, vector<64x112xf32> -> vector<64x112xf32>
    %cst_20 = arith.constant dense<0.000000e+00> : vector<112x112xf32>
    %21 = tpu.matmul %0, %20, %cst_20 {dimension_numbers = #tpu.dot_dimension_numbers<[1], [0], [0], [1], [0, 0, 1, 1], [], []>} : vector<112x64xf32>, vector<64x112xf32>, vector<112x112xf32> -> vector<112x112xf32>
    %22 = arith.truncf %21 : vector<112x112xf32> to vector<112x112xbf16>
    %c2_21 = arith.constant 2 : index
    %c0_22 = arith.constant 0 : index
    %c0_23 = arith.constant 0 : index
    %23 = vector.load %arg4[%c2_21, %c0_22, %c0_23] : memref<8x112x112xbf16, #tpu.memory_space<vmem>>, vector<1x112x112xbf16>
    %24 = vector.shape_cast %23 : vector<1x112x112xbf16> to vector<112x112xbf16>
    %25 = vector.shape_cast %22 : vector<112x112xbf16> to vector<1x112x112xbf16>
    tpu.vector_store %arg4[%c2_21, %c0_22, %c0_23], %25 {strides = array<i32>} : memref<8x112x112xbf16, #tpu.memory_space<vmem>>, vector<1x112x112xbf16>,
    %c3 = arith.constant 3 : index
    %c0_24 = arith.constant 0 : index
    %c0_25 = arith.constant 0 : index
    %26 = vector.load %arg3[%c3, %c0_24, %c0_25] : memref<8x64x64xf32, #tpu.memory_space<vmem>>, vector<1x64x64xf32>
    %27 = vector.shape_cast %26 : vector<1x64x64xf32> to vector<64x64xf32>
    %cst_26 = arith.constant dense<0.000000e+00> : vector<64x112xf32>
    %28 = tpu.matmul %27, %1, %cst_26 {dimension_numbers = #tpu.dot_dimension_numbers<[1], [0], [0], [1], [0, 0, 1, 1], [], []>} : vector<64x64xf32>, vector<64x112xf32>, vector<64x112xf32> -> vector<64x112xf32>
    %cst_27 = arith.constant dense<0.000000e+00> : vector<112x112xf32>
    %29 = tpu.matmul %0, %28, %cst_27 {dimension_numbers = #tpu.dot_dimension_numbers<[1], [0], [0], [1], [0, 0, 1, 1], [], []>} : vector<112x64xf32>, vector<64x112xf32>, vector<112x112xf32> -> vector<112x112xf32>
    %30 = arith.truncf %29 : vector<112x112xf32> to vector<112x112xbf16>
    %c3_28 = arith.constant 3 : index
    %c0_29 = arith.constant 0 : index
    %c0_30 = arith.constant 0 : index
    %31 = vector.load %arg4[%c3_28, %c0_29, %c0_30] : memref<8x112x112xbf16, #tpu.memory_space<vmem>>, vector<1x112x112xbf16>
    %32 = vector.shape_cast %31 : vector<1x112x112xbf16> to vector<112x112xbf16>
    %33 = vector.shape_cast %30 : vector<112x112xbf16> to vector<1x112x112xbf16>
    tpu.vector_store %arg4[%c3_28, %c0_29, %c0_30], %33 {strides = array<i32>} : memref<8x112x112xbf16, #tpu.memory_space<vmem>>, vector<1x112x112xbf16>,
    %c4 = arith.constant 4 : index
    %c0_31 = arith.constant 0 : index
    %c0_32 = arith.constant 0 : index
    %34 = vector.load %arg3[%c4, %c0_31, %c0_32] : memref<8x64x64xf32, #tpu.memory_space<vmem>>, vector<1x64x64xf32>
    %35 = vector.shape_cast %34 : vector<1x64x64xf32> to vector<64x64xf32>
    %cst_33 = arith.constant dense<0.000000e+00> : vector<64x112xf32>
    %36 = tpu.matmul %35, %1, %cst_33 {dimension_numbers = #tpu.dot_dimension_numbers<[1], [0], [0], [1], [0, 0, 1, 1], [], []>} : vector<64x64xf32>, vector<64x112xf32>, vector<64x112xf32> -> vector<64x112xf32>
    %cst_34 = arith.constant dense<0.000000e+00> : vector<112x112xf32>
    %37 = tpu.matmul %0, %36, %cst_34 {dimension_numbers = #tpu.dot_dimension_numbers<[1], [0], [0], [1], [0, 0, 1, 1], [], []>} : vector<112x64xf32>, vector<64x112xf32>, vector<112x112xf32> -> vector<112x112xf32>
    %38 = arith.truncf %37 : vector<112x112xf32> to vector<112x112xbf16>
    %c4_35 = arith.constant 4 : index
    %c0_36 = arith.constant 0 : index
    %c0_37 = arith.constant 0 : index
    %39 = vector.load %arg4[%c4_35, %c0_36, %c0_37] : memref<8x112x112xbf16, #tpu.memory_space<vmem>>, vector<1x112x112xbf16>
    %40 = vector.shape_cast %39 : vector<1x112x112xbf16> to vector<112x112xbf16>
    %41 = vector.shape_cast %38 : vector<112x112xbf16> to vector<1x112x112xbf16>
    tpu.vector_store %arg4[%c4_35, %c0_36, %c0_37], %41 {strides = array<i32>} : memref<8x112x112xbf16, #tpu.memory_space<vmem>>, vector<1x112x112xbf16>,
    %c5 = arith.constant 5 : index
    %c0_38 = arith.constant 0 : index
    %c0_39 = arith.constant 0 : index
    %42 = vector.load %arg3[%c5, %c0_38, %c0_39] : memref<8x64x64xf32, #tpu.memory_space<vmem>>, vector<1x64x64xf32>
    %43 = vector.shape_cast %42 : vector<1x64x64xf32> to vector<64x64xf32>
    %cst_40 = arith.constant dense<0.000000e+00> : vector<64x112xf32>
    %44 = tpu.matmul %43, %1, %cst_40 {dimension_numbers = #tpu.dot_dimension_numbers<[1], [0], [0], [1], [0, 0, 1, 1], [], []>} : vector<64x64xf32>, vector<64x112xf32>, vector<64x112xf32> -> vector<64x112xf32>
    %cst_41 = arith.constant dense<0.000000e+00> : vector<112x112xf32>
    %45 = tpu.matmul %0, %44, %cst_41 {dimension_numbers = #tpu.dot_dimension_numbers<[1], [0], [0], [1], [0, 0, 1, 1], [], []>} : vector<112x64xf32>, vector<64x112xf32>, vector<112x112xf32> -> vector<112x112xf32>
    %46 = arith.truncf %45 : vector<112x112xf32> to vector<112x112xbf16>
    %c5_42 = arith.constant 5 : index
    %c0_43 = arith.constant 0 : index
    %c0_44 = arith.constant 0 : index
    %47 = vector.load %arg4[%c5_42, %c0_43, %c0_44] : memref<8x112x112xbf16, #tpu.memory_space<vmem>>, vector<1x112x112xbf16>
    %48 = vector.shape_cast %47 : vector<1x112x112xbf16> to vector<112x112xbf16>
    %49 = vector.shape_cast %46 : vector<112x112xbf16> to vector<1x112x112xbf16>
    tpu.vector_store %arg4[%c5_42, %c0_43, %c0_44], %49 {strides = array<i32>} : memref<8x112x112xbf16, #tpu.memory_space<vmem>>, vector<1x112x112xbf16>,
    %c6 = arith.constant 6 : index
    %c0_45 = arith.constant 0 : index
    %c0_46 = arith.constant 0 : index
    %50 = vector.load %arg3[%c6, %c0_45, %c0_46] : memref<8x64x64xf32, #tpu.memory_space<vmem>>, vector<1x64x64xf32>
    %51 = vector.shape_cast %50 : vector<1x64x64xf32> to vector<64x64xf32>
    %cst_47 = arith.constant dense<0.000000e+00> : vector<64x112xf32>
    %52 = tpu.matmul %51, %1, %cst_47 {dimension_numbers = #tpu.dot_dimension_numbers<[1], [0], [0], [1], [0, 0, 1, 1], [], []>} : vector<64x64xf32>, vector<64x112xf32>, vector<64x112xf32> -> vector<64x112xf32>
    %cst_48 = arith.constant dense<0.000000e+00> : vector<112x112xf32>
    %53 = tpu.matmul %0, %52, %cst_48 {dimension_numbers = #tpu.dot_dimension_numbers<[1], [0], [0], [1], [0, 0, 1, 1], [], []>} : vector<112x64xf32>, vector<64x112xf32>, vector<112x112xf32> -> vector<112x112xf32>
    %54 = arith.truncf %53 : vector<112x112xf32> to vector<112x112xbf16>
    %c6_49 = arith.constant 6 : index
    %c0_50 = arith.constant 0 : index
    %c0_51 = arith.constant 0 : index
    %55 = vector.load %arg4[%c6_49, %c0_50, %c0_51] : memref<8x112x112xbf16, #tpu.memory_space<vmem>>, vector<1x112x112xbf16>
    %56 = vector.shape_cast %55 : vector<1x112x112xbf16> to vector<112x112xbf16>
    %57 = vector.shape_cast %54 : vector<112x112xbf16> to vector<1x112x112xbf16>
    tpu.vector_store %arg4[%c6_49, %c0_50, %c0_51], %57 {strides = array<i32>} : memref<8x112x112xbf16, #tpu.memory_space<vmem>>, vector<1x112x112xbf16>,
    %c7 = arith.constant 7 : index
    %c0_52 = arith.constant 0 : index
    %c0_53 = arith.constant 0 : index
    %58 = vector.load %arg3[%c7, %c0_52, %c0_53] : memref<8x64x64xf32, #tpu.memory_space<vmem>>, vector<1x64x64xf32>
    %59 = vector.shape_cast %58 : vector<1x64x64xf32> to vector<64x64xf32>
    %cst_54 = arith.constant dense<0.000000e+00> : vector<64x112xf32>
    %60 = tpu.matmul %59, %1, %cst_54 {dimension_numbers = #tpu.dot_dimension_numbers<[1], [0], [0], [1], [0, 0, 1, 1], [], []>} : vector<64x64xf32>, vector<64x112xf32>, vector<64x112xf32> -> vector<64x112xf32>
    %cst_55 = arith.constant dense<0.000000e+00> : vector<112x112xf32>
    %61 = tpu.matmul %0, %60, %cst_55 {dimension_numbers = #tpu.dot_dimension_numbers<[1], [0], [0], [1], [0, 0, 1, 1], [], []>} : vector<112x64xf32>, vector<64x112xf32>, vector<112x112xf32> -> vector<112x112xf32>
    %62 = arith.truncf %61 : vector<112x112xf32> to vector<112x112xbf16>
    %c7_56 = arith.constant 7 : index
    %c0_57 = arith.constant 0 : index
    %c0_58 = arith.constant 0 : index
    %63 = vector.load %arg4[%c7_56, %c0_57, %c0_58] : memref<8x112x112xbf16, #tpu.memory_space<vmem>>, vector<1x112x112xbf16>
    %64 = vector.shape_cast %63 : vector<1x112x112xbf16> to vector<112x112xbf16>
    %65 = vector.shape_cast %62 : vector<112x112xbf16> to vector<1x112x112xbf16>
    tpu.vector_store %arg4[%c7_56, %c0_57, %c0_58], %65 {strides = array<i32>} : memref<8x112x112xbf16, #tpu.memory_space<vmem>>, vector<1x112x112xbf16>,
    return
  }
  func.func @transform_0(%arg0: i32) -> (i32, i32) {
    %c0_i32 = arith.constant 0 : i32
    %c0_i32_0 = arith.constant 0 : i32
    %c0_i32_1 = arith.constant 0 : i32
    return %c0_i32, %c0_i32_0 : i32, i32
  }
  func.func @transform_1(%arg0: i32) -> (i32, i32) {
    %c0_i32 = arith.constant 0 : i32
    %c0_i32_0 = arith.constant 0 : i32
    %c0_i32_1 = arith.constant 0 : i32
    return %c0_i32, %c0_i32_0 : i32, i32
  }
  func.func @transform_2(%arg0: i32) -> (i32, i32, i32) {
    %c0_i32 = arith.constant 0 : i32
    %c0_i32_0 = arith.constant 0 : i32
    %c0_i32_1 = arith.constant 0 : i32
    return %arg0, %c0_i32, %c0_i32_0 : i32, i32, i32
  }
  func.func @transform_3(%arg0: i32) -> (i32, i32, i32) {
    %c0_i32 = arith.constant 0 : i32
    %c0_i32_0 = arith.constant 0 : i32
    %c0_i32_1 = arith.constant 0 : i32
    return %arg0, %c0_i32, %c0_i32_0 : i32, i32, i32
  }
}

</mosaic_0001>

<bundles_post_ra>
// kernel: tpu_custom_call.1
= control target key start
LH: loop header
LB: loop body
LE: loop exit
PB: predicated region body
PF: predicated region fallthrough
CT: control target
= control target key end

     0   :  { %8 = vsyncpa [#allocation3], 0  ;;  %s5098_s0 = inlined_call_operand.vmem [shape: f32[112,64], index: 0, kind: input, shape index: {}]   ;;  %s5099_s1 = inlined_call_operand.vmem [shape: f32[64,112], index: 1, kind: input, shape index: {}]   ;;  %s5100_s2 = inlined_call_operand.hbm [shape: f32[8,64,64], index: 2, kind: input, shape index: {}]   ;;  %s5101_s3 = inlined_call_operand.hbm [shape: bf16[8,112,112], index: 3, kind: output, shape index: {}]  }
   0x1   :  { %9 = vsyncpa [#allocation4], 0  ;;  %s4418_s12 = smov [#allocation2]   ;;  %s4370_s16 = scalar_lea.hbm %s5100_s2, 8192 }
   0x2   :  { %s19_s13 = sshll.u32 %s4418_s12, 4  ;;  %p4371_p0 = scmp.ne.s32.totalorder %s5100_s2, %s4370_s16  ;;  %s20_s13 = int_to_ptr.vmem [resolvable:$true] %s19_s13 }
   0x3   :  { %p4374_p1 = scmp.lt.u32.totalorder %s4370_s16, %s5100_s2 }
   0x5   :  { %p4376_p2 = pnand %p4374_p1, %p4371_p0 }
   0x7   :  { %4379 = shalt.err (!%p4376_p2)
}
   0x8   :  { %s4380_s21 = scalar_lea.vmem %s20_s13, 8192  ;;  %p4385_p4 = scmp.lt.s32.totalorder %s20_s13, %s20_s13 }
   0x9   :  { %p4381_p3 = scmp.ne.s32.totalorder %s20_s13, %s4380_s21  ;;  %p4386_p5 = scmp.lt.s32.totalorder %s4380_s21, %s4380_s21 }
   0xb   :  { %p4387_p6 = por %p4386_p5, %p4385_p4 }
   0xd   :  { %p4388_p7 = pnand %p4387_p6, %p4381_p3 }
   0xf   :  { %4391 = shalt.err (!%p4388_p7)
}
  0x10   :  { %s4419_s22 = smov 128   ;;  %s4420_s23 = smov 8  }
  0x11   :  { %25 = dma.hbm_to_vmem [thread:$0]  %s5100_s2, 8192, %s20_s13, [#allocation3], %s4419_s22, %s4419_s22, %s4420_s23  }
  0x12   :  { %4414 = dma.done.wait [#allocation3], 8192  }
  0x13   :  { %4415 = vsyncadd [#allocation3], 4294959104  ;;  %v43_v0 = vld [vmem:[%s5099_s1] sm:$0xff]  ;;  %v44_v1 = vld [vmem:[%s5099_s1 + $0x8] sm:$0xff]  ;;  %vm59_vm0 = vcmask 523264   ;;  %vm422_vm1 = vcmask 912384  }
  0x14   :  { %v45_v2 = vld [vmem:[%s5099_s1 + $0x10] sm:$0xff]  ;;  %v4465_v3 = vpack.c.bf16 %v44_v1, %v43_v0  ;;  %v46_v4 = vld [vmem:[%s5099_s1 + $0x18] sm:$0xff]  ;;  %v47_v6 = vld [vmem:[%s5099_s1 + $0x20] sm:$0xff] }
  0x15   :  { %v4470_v5 = vpack.c.bf16 %v46_v4, %v45_v2  ;;  %v48_v7 = vld [vmem:[%s5099_s1 + $0x28] sm:$0xff]  ;;  %v51_v8 = vld [vmem:[#allocation2] sm:$0xff]  ;;  %v50_v11 = vld [vmem:[%s5099_s1 + $0x38] sm:$0xff] }
  0x16   :  { %4087 = vmatprep.subr.bf16.mxu0 %v4465_v3  ;;  %3582 = vmatprep.mubr.msk.f32.mxu0 %vm59_vm0, %v51_v8  ;;  %v4482_v9 = vpack.c.bf16 %v48_v7, %v47_v6  ;;  %v49_v10 = vld [vmem:[%s5099_s1 + $0x30] sm:$0xff]  ;;  %v52_v13 = vld [vmem:[#allocation2 + $0x8] sm:$0xff]  ;;  %v53_v14 = vld [vmem:[#allocation2 + $0x10] sm:$0xff] }
  0x17   :  { %4089 = vmatpush3.bf16.msra.mxu0 %v4465_v3  ;;  %v4492_v12 = vpack.c.bf16 %v50_v11, %v49_v10  ;;  %v54_v15 = vld [vmem:[#allocation2 + $0x18] sm:$0xff]  ;;  %v55_v16 = vld [vmem:[#allocation2 + $0x20] sm:$0xff]  ;;  %v56_v17 = vld [vmem:[#allocation2 + $0x28] sm:$0xff] }
  0x18   :  { %4091 = vmatprep.subr.bf16.mxu0 %v4470_v5  ;;  %v57_v18 = vld [vmem:[#allocation2 + $0x30] sm:$0xff]  ;;  %v58_v19 = vld [vmem:[#allocation2 + $0x38] sm:$0xff]  ;;  %v438_v20 = vld [vmem:[#allocation2 + $0x40] sm:$0xff] }
  0x19   :  { %v439_v21 = vld [vmem:[#allocation2 + $0x48] sm:$0xff]  ;;  %v440_v22 = vld [vmem:[#allocation2 + $0x50] sm:$0xff]  ;;  %v441_v23 = vld [vmem:[#allocation2 + $0x58] sm:$0xff] }
  0x1a   :  { %v442_v24 = vld [vmem:[#allocation2 + $0x60] sm:$0xff]  ;;  %v443_v25 = vld [vmem:[#allocation2 + $0x68] sm:$0xff]  ;;  %v444_v26 = vld [vmem:[#allocation2 + $0x70] sm:$0xff] }
  0x1b   :  { %4093 = vmatpush3.bf16.msra.mxu0 %v4470_v5  ;;  %v445_v27 = vld [vmem:[#allocation2 + $0x78] sm:$0xff]  ;;  %v4531_v28 = vld [vmem:[%s5098_s0] sm:$0xff]  ;;  %v782_v29 = vld [vmem:[#allocation2 + $0x80] sm:$0xff] }
  0x1c   :  { %4095 = vmatprep.subr.bf16.mxu0 %v4482_v9  ;;  %3610 = vmatprep.mubr.msk.f32.mxu1 %vm59_vm0, %v4531_v28  ;;  %v783_v30 = vld [vmem:[#allocation2 + $0x88] sm:$0xff]  ;;  %v784_v31 = vld [vmem:[#allocation2 + $0x90] sm:$0xff]  ;;  %v785_v32 = vld [vmem:[#allocation2 + $0x98] sm:$0xff] }
  0x1d   :  { %v786_v33 = vld [vmem:[#allocation2 + $0xa0] sm:$0xff]  ;;  %v787_v34 = vld [vmem:[#allocation2 + $0xa8] sm:$0xff]  ;;  %v788_v35 = vld [vmem:[#allocation2 + $0xb0] sm:$0xff] }
  0x1e   :  { %v789_v36 = vld [vmem:[#allocation2 + $0xb8] sm:$0xff]  ;;  %v4553_v52 = vld [vmem:[%s5098_s0 + $0x10] sm:$0xff]  ;;  %v4562_v55 = vld [vmem:[%s5098_s0 + $0x18] sm:$0xff] }
  0x1f   :  { %4097 = vmatpush3.bf16.msra.mxu0 %v4482_v9  ;;  %v4548_v50 = vld [vmem:[%s5098_s0 + $0x8] sm:$0xff]  ;;  %v4567_v57 = vld [vmem:[%s5098_s0 + $0x20] sm:$0xff]  ;;  %v4581_v62 = vld [vmem:[%s5098_s0 + $0x30] sm:$0xff] }
  0x20   :  { %4099 = vmatprep.subr.bf16.mxu0 %v4492_v12  ;;  %v4576_v60 = vld [vmem:[%s5098_s0 + $0x28] sm:$0xff]  ;;  %v4590_v1 = vld [vmem:[%s5098_s0 + $0x38] sm:$0xff]  ;;  %v4595_v4 = vld [vmem:[%s5098_s0 + $0x40] sm:$0xff] }
  0x21   :  { %v4604_v7 = vld [vmem:[%s5098_s0 + $0x48] sm:$0xff]  ;;  %v4609_v8 = vld [vmem:[%s5098_s0 + $0x50] sm:$0xff]  ;;  %v4619_v10 = vld [vmem:[%s5098_s0 + $0x58] sm:$0xff] }
  0x22   :  { %v4624_v11 = vld [vmem:[%s5098_s0 + $0x60] sm:$0xff] }
  0x23   :  { %4101 = vmatpush3.bf16.msra.mxu0 %v4492_v12 }
  0x24   :  { %4119 = vmatprep.subr.bf16.mxu0 %v4465_v3 }
  0x26   :  { %3583 = vmatmul.mubr.msk.f32.vlgmr.msra.gmra.mrb[0].mxu0 %vm59_vm0, %v52_v13  ;;  %v4633_v13 = vld [vmem:[%s5098_s0 + $0x68] sm:$0xff] }
  0x27   :  { %3585 = vmatprep.mubr.msk.f32.mxu0 %vm59_vm0, %v53_v14  ;;  %4121 = vmatpush3.bf16.msra.mxu0 %v4465_v3  ;;  %v1126_v14 = vld [vmem:[#allocation2 + $0xc0] sm:$0xff] }
  0x28   :  { %4123 = vmatprep.subr.bf16.mxu0 %v4470_v5 }
  0x2a   :  { %3586 = vmatmul.mubr.msk.f32.gmra.mrb[2].mxu0 %vm59_vm0, %v54_v15  ;;  %v1127_v15 = vld [vmem:[#allocation2 + $0xc8] sm:$0xff] }
  0x2b   :  { %3588 = vmatprep.mubr.msk.f32.mxu0 %vm59_vm0, %v55_v16  ;;  %4125 = vmatpush3.bf16.msra.mxu0 %v4470_v5  ;;  %v1128_v16 = vld [vmem:[#allocation2 + $0xd0] sm:$0xff] }
  0x2c   :  { %4127 = vmatprep.subr.bf16.mxu0 %v4482_v9 }
  0x2e   :  { %3589 = vmatmul.mubr.msk.f32.gmra.mrb[4].mxu0 %vm59_vm0, %v56_v17  ;;  %v1129_v17 = vld [vmem:[#allocation2 + $0xd8] sm:$0xff] }
  0x2f   :  { %3591 = vmatprep.mubr.msk.f32.mxu0 %vm59_vm0, %v57_v18  ;;  %4129 = vmatpush3.bf16.msra.mxu0 %v4482_v9  ;;  %v1130_v18 = vld [vmem:[#allocation2 + $0xe0] sm:$0xff] }
  0x30   :  { %4131 = vmatprep.subr.bf16.mxu0 %v4492_v12 }
  0x32   :  { %3592 = vmatmul.mubr.msk.f32.gmra.mrb[6].mxu0 %vm59_vm0, %v58_v19  ;;  %v1131_v19 = vld [vmem:[#allocation2 + $0xe8] sm:$0xff] }
  0x33   :  { %4133 = vmatpush3.bf16.msra.mxu0 %v4492_v12  ;;  %3647 = vmatprep.mubr.msk.f32.mxu0 %vm59_vm0, %v438_v20  ;;  %v1132_v20 = vld [vmem:[#allocation2 + $0xf0] sm:$0xff] }
  0x34   :  { %4151 = vmatprep.subr.bf16.mxu0 %v4465_v3 }
  0x36   :  { %3648 = vmatmul.mubr.msk.f32.vlgmr.msra.gmra.mrb[8].mxu0 %vm59_vm0, %v439_v21  ;;  %v1133_v21 = vld [vmem:[#allocation2 + $0xf8] sm:$0xff] }
  0x37   :  { %3650 = vmatprep.mubr.msk.f32.mxu0 %vm59_vm0, %v440_v22  ;;  %4153 = vmatpush3.bf16.msra.mxu0 %v4465_v3 }
  0x38   :  { %4155 = vmatprep.subr.bf16.mxu0 %v4470_v5 }
  0x3a   :  { %3651 = vmatmul.mubr.msk.f32.gmra.mrb[10].mxu0 %vm59_vm0, %v441_v23 }
  0x3b   :  { %3653 = vmatprep.mubr.msk.f32.mxu0 %vm59_vm0, %v442_v24  ;;  %4157 = vmatpush3.bf16.msra.mxu0 %v4470_v5 }
  0x3c   :  { %4159 = vmatprep.subr.bf16.mxu0 %v4482_v9 }
  0x3e   :  { %3654 = vmatmul.mubr.msk.f32.gmra.mrb[12].mxu0 %vm59_vm0, %v443_v25 }
  0x3f   :  { %3656 = vmatprep.mubr.msk.f32.mxu0 %vm59_vm0, %v444_v26  ;;  %4161 = vmatpush3.bf16.msra.mxu0 %v4482_v9 }
  0x40   :  { %4163 = vmatprep.subr.bf16.mxu0 %v4492_v12 }
  0x42   :  { %3657 = vmatmul.mubr.msk.f32.gmra.mrb[14].mxu0 %vm59_vm0, %v445_v27 }
  0x43   :  { %4165 = vmatpush3.bf16.msra.mxu0 %v4492_v12  ;;  %3712 = vmatprep.mubr.msk.f32.mxu0 %vm59_vm0, %v782_v29 }
  0x46   :  { %3713 = vmatmul.mubr.msk.f32.vlgmr.msra.gmra.mrb[16].mxu0 %vm59_vm0, %v783_v30 }
  0x47   :  { %3715 = vmatprep.mubr.msk.f32.mxu0 %vm59_vm0, %v784_v31 }
  0x4a   :  { %3716 = vmatmul.mubr.msk.f32.gmra.mrb[18].mxu0 %vm59_vm0, %v785_v32 }
  0x4b   :  { %3718 = vmatprep.mubr.msk.f32.mxu0 %vm59_vm0, %v786_v33 }
  0x4e   :  { %3719 = vmatmul.mubr.msk.f32.gmra.mrb[20].mxu0 %vm59_vm0, %v787_v34 }
  0x4f   :  { %3721 = vmatprep.mubr.msk.f32.mxu0 %vm59_vm0, %v788_v35  ;;  %v1470_v35 = vld [vmem:[#allocation2 + $0x100] sm:$0xff] }
  0x52   :  { %3722 = vmatmul.mubr.msk.f32.gmra.mrb[22].mxu0 %vm59_vm0, %v789_v36  ;;  %v1471_v36 = vld [vmem:[#allocation2 + $0x108] sm:$0xff] }
  0x53   :  { %3740 = vmatprep.mubr.msk.f32.mxu0 %vm59_vm0, %v4531_v28 }
  0xf9   :  { %v3584_v37 = vpop.f32.mrb[0].mxu0 }
  0xfa   :  { %v150_v38 = vpop.f32.mrb[1].mxu0 }
  0xfb   :  { %v4102_v39 = vpack.c.bf16 %v3584_v37, %v150_v38  ;;  %v1472_v37 = vld [vmem:[#allocation2 + $0x110] sm:$0xff]  ;;  %v1473_v38 = vld [vmem:[#allocation2 + $0x118] sm:$0xff] }
  0xfd   :  { %v3587_v40 = vpop.f32.mrb[2].mxu0  ;;  %4103 = vmatprep.subr.bf16.mxu1 %v4102_v39 }
  0xfe   :  { %v160_v41 = vpop.f32.mrb[3].mxu0  ;;  %4105 = vmatpush3.bf16.msra.mxu1 %v4102_v39  ;;  %v1474_v39 = vld [vmem:[#allocation2 + $0x120] sm:$0xff] }
  0xff   :  { %v4106_v42 = vpack.c.bf16 %v3587_v40, %v160_v41  ;;  %v1475_v40 = vld [vmem:[#allocation2 + $0x128] sm:$0xff]  ;;  %v1476_v41 = vld [vmem:[#allocation2 + $0x130] sm:$0xff] }
 0x101   :  { %v3590_v43 = vpop.f32.mrb[4].mxu0  ;;  %4107 = vmatprep.subr.bf16.mxu1 %v4106_v42 }
 0x102   :  { %v170_v44 = vpop.f32.mrb[5].mxu0  ;;  %4109 = vmatpush3.bf16.msra.mxu1 %v4106_v42  ;;  %v1477_v42 = vld [vmem:[#allocation2 + $0x138] sm:$0xff] }
 0x103   :  { %v4110_v45 = vpack.c.bf16 %v3590_v43, %v170_v44 }
 0x105   :  { %v3593_v46 = vpop.f32.mrb[6].mxu0  ;;  %4111 = vmatprep.subr.bf16.mxu1 %v4110_v45 }
 0x106   :  { %v180_v47 = vpop.f32.mrb[7].mxu0  ;;  %4113 = vmatpush3.bf16.msra.mxu1 %v4110_v45 }
 0x107   :  { %v4114_v48 = vpack.c.bf16 %v3593_v46, %v180_v47 }
 0x109   :  { %4115 = vmatprep.subr.bf16.mxu1 %v4114_v48  ;;  %v3649_v49 = vpop.f32.mrb[8].mxu0 }
 0x10a   :  { %4117 = vmatpush3.bf16.msra.mxu1 %v4114_v48  ;;  %v536_v51 = vpop.f32.mrb[9].mxu0 }
 0x10b   :  { %v4134_v53 = vpack.c.bf16 %v3649_v49, %v536_v51 }
 0x10d   :  { %3611 = vmatmul.mubr.msk.f32.vlgmr.msra.gmra.mrb[0].mxu1 %vm59_vm0, %v4548_v50  ;;  %4135 = vmatprep.subr.bf16.mxu1 %v4134_v53  ;;  %v3652_v54 = vpop.f32.mrb[10].mxu0 }
 0x10e   :  { %3613 = vmatprep.mubr.msk.f32.mxu1 %vm59_vm0, %v4553_v52  ;;  %4137 = vmatpush3.bf16.msra.mxu1 %v4134_v53  ;;  %v546_v56 = vpop.f32.mrb[11].mxu0 }
 0x10f   :  { %v4138_v58 = vpack.c.bf16 %v3652_v54, %v546_v56 }
 0x111   :  { %3614 = vmatmul.mubr.msk.f32.gmra.mrb[2].mxu1 %vm59_vm0, %v4562_v55  ;;  %4139 = vmatprep.subr.bf16.mxu1 %v4138_v58  ;;  %v3655_v59 = vpop.f32.mrb[12].mxu0 }
 0x112   :  { %3616 = vmatprep.mubr.msk.f32.mxu1 %vm59_vm0, %v4567_v57  ;;  %4141 = vmatpush3.bf16.msra.mxu1 %v4138_v58  ;;  %v556_v61 = vpop.f32.mrb[13].mxu0 }
 0x113   :  { %v4142_v63 = vpack.c.bf16 %v3655_v59, %v556_v61 }
 0x115   :  { %3617 = vmatmul.mubr.msk.f32.gmra.mrb[4].mxu1 %vm59_vm0, %v4576_v60  ;;  %v3658_v0 = vpop.f32.mrb[14].mxu0  ;;  %4143 = vmatprep.subr.bf16.mxu1 %v4142_v63 }
 0x116   :  { %3619 = vmatprep.mubr.msk.f32.mxu1 %vm59_vm0, %v4581_v62  ;;  %v566_v2 = vpop.f32.mrb[15].mxu0  ;;  %4145 = vmatpush3.bf16.msra.mxu1 %v4142_v63 }
 0x117   :  { %v4146_v6 = vpack.c.bf16 %v3658_v0, %v566_v2 }
 0x119   :  { %3620 = vmatmul.mubr.msk.f32.gmra.mrb[6].mxu1 %vm59_vm0, %v4590_v1  ;;  %4147 = vmatprep.subr.bf16.mxu1 %v4146_v6  ;;  %v3714_v22 = vpop.f32.mrb[16].mxu0 }
 0x11a   :  { %3622 = vmatprep.mubr.msk.f32.mxu1 %vm59_vm0, %v4595_v4  ;;  %4149 = vmatpush3.bf16.msra.mxu1 %v4146_v6  ;;  %v880_v23 = vpop.f32.mrb[17].mxu0 }
 0x11b   :  { %4183 = vmatprep.subr.bf16.mxu1 %v4465_v3  ;;  %v4166_v24 = vpack.c.bf16 %v3714_v22, %v880_v23 }
 0x11d   :  { %3623 = vmatmul.mubr.msk.f32.gmra.mrb[8].mxu1 %vm59_vm0, %v4604_v7  ;;  %v3717_v25 = vpop.f32.mrb[18].mxu0  ;;  %4167 = vmatprep.subr.bf16.mxu0 %v4166_v24 }
 0x11e   :  { %3625 = vmatprep.mubr.msk.f32.mxu1 %vm59_vm0, %v4609_v8  ;;  %v890_v26 = vpop.f32.mrb[19].mxu0  ;;  %4169 = vmatpush3.bf16.msra.mxu0 %v4166_v24 }
 0x11f   :  { %v4170_v27 = vpack.c.bf16 %v3717_v25, %v890_v26 }
 0x121   :  { %3626 = vmatmul.mubr.msk.f32.gmra.mrb[10].mxu1 %vm59_vm0, %v4619_v10  ;;  %v3720_v29 = vpop.f32.mrb[20].mxu0  ;;  %4171 = vmatprep.subr.bf16.mxu0 %v4170_v27 }
 0x122   :  { %3628 = vmatprep.mubr.msk.f32.mxu1 %vm59_vm0, %v4624_v11  ;;  %v900_v30 = vpop.f32.mrb[21].mxu0  ;;  %4173 = vmatpush3.bf16.msra.mxu0 %v4170_v27 }
 0x123   :  { %v4174_v31 = vpack.c.bf16 %v3720_v29, %v900_v30 }
 0x125   :  { %3629 = vmatmul.mubr.msk.f32.gmra.mrb[12].mxu1 %vm59_vm0, %v4633_v13  ;;  %v3723_v32 = vpop.f32.mrb[22].mxu0  ;;  %4175 = vmatprep.subr.bf16.mxu0 %v4174_v31 }
 0x126   :  { %3675 = vmatprep.mubr.msk.f32.mxu1 %vm59_vm0, %v4531_v28  ;;  %v910_v33 = vpop.f32.mrb[23].mxu0  ;;  %4177 = vmatpush3.bf16.msra.mxu0 %v4174_v31 }
 0x127   :  { %v4178_v34 = vpack.c.bf16 %v3723_v32, %v910_v33 }
 0x129   :  { %3676 = vmatmul.mubr.msk.f32.vlgmr.msra.gmra.mrb[14].mxu1 %vm59_vm0, %v4548_v50  ;;  %4179 = vmatprep.subr.bf16.mxu0 %v4178_v34 }
 0x12a   :  { %3678 = vmatprep.mubr.msk.f32.mxu1 %vm59_vm0, %v4553_v52  ;;  %4185 = vmatpush3.bf16.msra.mxu1 %v4465_v3 }
 0x12b   :  { %4187 = vmatprep.subr.bf16.mxu1 %v4470_v5  ;;  %4181 = vmatpush3.bf16.msra.mxu0 %v4178_v34 }
 0x12c   :  { %4215 = vmatprep.subr.bf16.mxu0 %v4465_v3 }
 0x12d   :  { %3679 = vmatmul.mubr.msk.f32.gmra.mrb[16].mxu1 %vm59_vm0, %v4562_v55 }
 0x12e   :  { %3681 = vmatprep.mubr.msk.f32.mxu1 %vm59_vm0, %v4567_v57  ;;  %4189 = vmatpush3.bf16.msra.mxu1 %v4470_v5 }
 0x12f   :  { %4191 = vmatprep.subr.bf16.mxu1 %v4482_v9  ;;  %3741 = vmatmul.mubr.msk.f32.vlgmr.msra.gmra.mrb[24].mxu0 %vm59_vm0, %v4548_v50 }
 0x130   :  { %3743 = vmatprep.mubr.msk.f32.mxu0 %vm59_vm0, %v4553_v52  ;;  %4217 = vmatpush3.bf16.msra.mxu0 %v4465_v3 }
 0x131   :  { %3682 = vmatmul.mubr.msk.f32.gmra.mrb[18].mxu1 %vm59_vm0, %v4576_v60  ;;  %4219 = vmatprep.subr.bf16.mxu0 %v4470_v5 }
 0x132   :  { %3684 = vmatprep.mubr.msk.f32.mxu1 %vm59_vm0, %v4581_v62  ;;  %4193 = vmatpush3.bf16.msra.mxu1 %v4482_v9 }
 0x133   :  { %4195 = vmatprep.subr.bf16.mxu1 %v4492_v12  ;;  %3744 = vmatmul.mubr.msk.f32.gmra.mrb[26].mxu0 %vm59_vm0, %v4562_v55 }
 0x134   :  { %3746 = vmatprep.mubr.msk.f32.mxu0 %vm59_vm0, %v4567_v57  ;;  %4221 = vmatpush3.bf16.msra.mxu0 %v4470_v5 }
 0x135   :  { %3685 = vmatmul.mubr.msk.f32.gmra.mrb[20].mxu1 %vm59_vm0, %v4590_v1  ;;  %4223 = vmatprep.subr.bf16.mxu0 %v4482_v9 }
 0x136   :  { %3687 = vmatprep.mubr.msk.f32.mxu1 %vm59_vm0, %v4595_v4  ;;  %4197 = vmatpush3.bf16.msra.mxu1 %v4492_v12 }
 0x137   :  { %3747 = vmatmul.mubr.msk.f32.gmra.mrb[28].mxu0 %vm59_vm0, %v4576_v60 }
 0x138   :  { %3749 = vmatprep.mubr.msk.f32.mxu0 %vm59_vm0, %v4581_v62  ;;  %4225 = vmatpush3.bf16.msra.mxu0 %v4482_v9 }
 0x139   :  { %3688 = vmatmul.mubr.msk.f32.gmra.mrb[22].mxu1 %vm59_vm0, %v4604_v7  ;;  %4227 = vmatprep.subr.bf16.mxu0 %v4492_v12 }
 0x13a   :  { %3690 = vmatprep.mubr.msk.f32.mxu1 %vm59_vm0, %v4609_v8 }
 0x13b   :  { %3750 = vmatmul.mubr.msk.f32.gmra.mrb[30].mxu0 %vm59_vm0, %v4590_v1 }
 0x13c   :  { %3752 = vmatprep.mubr.msk.f32.mxu0 %vm59_vm0, %v4595_v4  ;;  %4229 = vmatpush3.bf16.msra.mxu0 %v4492_v12 }
 0x13d   :  { %3691 = vmatmul.mubr.msk.f32.gmra.mrb[24].mxu1 %vm59_vm0, %v4619_v10 }
 0x13e   :  { %3693 = vmatprep.mubr.msk.f32.mxu1 %vm59_vm0, %v4624_v11 }
 0x13f   :  { %3753 = vmatmul.mubr.msk.f32.gmra.mrb[32].mxu0 %vm59_vm0, %v4604_v7 }
 0x140   :  { %3755 = vmatprep.mubr.msk.f32.mxu0 %vm59_vm0, %v4609_v8 }
 0x141   :  { %3694 = vmatmul.mubr.msk.f32.gmra.mrb[26].mxu1 %vm59_vm0, %v4633_v13 }
 0x142   :  { %3777 = vmatprep.mubr.msk.f32.mxu1 %vm59_vm0, %v1126_v14 }
 0x143   :  { %3756 = vmatmul.mubr.msk.f32.gmra.mrb[34].mxu0 %vm59_vm0, %v4619_v10 }
 0x144   :  { %3758 = vmatprep.mubr.msk.f32.mxu0 %vm59_vm0, %v4624_v11 }
 0x145   :  { %3778 = vmatmul.mubr.msk.f32.vlgmr.msra.gmra.mrb[28].mxu1 %vm59_vm0, %v1127_v15 }
 0x146   :  { %3780 = vmatprep.mubr.msk.f32.mxu1 %vm59_vm0, %v1128_v16 }
 0x147   :  { %3759 = vmatmul.mubr.msk.f32.gmra.mrb[36].mxu0 %vm59_vm0, %v4633_v13 }
 0x148   :  { %3842 = vmatprep.mubr.msk.f32.mxu0 %vm59_vm0, %v1470_v35 }
 0x149   :  { %3781 = vmatmul.mubr.msk.f32.gmra.mrb[30].mxu1 %vm59_vm0, %v1129_v17 }
 0x14a   :  { %3783 = vmatprep.mubr.msk.f32.mxu1 %vm59_vm0, %v1130_v18 }
 0x14b   :  { %3843 = vmatmul.mubr.msk.f32.vlgmr.msra.gmra.mrb[38].mxu0 %vm59_vm0, %v1471_v36 }
 0x14c   :  { %3845 = vmatprep.mubr.msk.f32.mxu0 %vm59_vm0, %v1472_v37 }
 0x14d   :  { %3784 = vmatmul.mubr.msk.f32.gmra.mrb[32].mxu1 %vm59_vm0, %v1131_v19 }
 0x14e   :  { %3786 = vmatprep.mubr.msk.f32.mxu1 %vm59_vm0, %v1132_v20 }
 0x14f   :  { %3846 = vmatmul.mubr.msk.f32.gmra.mrb[40].mxu0 %vm59_vm0, %v1473_v38 }
 0x150   :  { %3848 = vmatprep.mubr.msk.f32.mxu0 %vm59_vm0, %v1474_v39 }
 0x151   :  { %3787 = vmatmul.mubr.msk.f32.gmra.mrb[34].mxu1 %vm59_vm0, %v1133_v21 }
 0x152   :  { %3805 = vmatprep.mubr.msk.f32.mxu1 %vm59_vm0, %v4531_v28 }
 0x153   :  { %3849 = vmatmul.mubr.msk.f32.gmra.mrb[42].mxu0 %vm59_vm0, %v1475_v40 }
 0x154   :  { %3851 = vmatprep.mubr.msk.f32.mxu0 %vm59_vm0, %v1476_v41 }
 0x157   :  { %3852 = vmatmul.mubr.msk.f32.gmra.mrb[44].mxu0 %vm59_vm0, %v1477_v42 }
 0x158   :  { %3870 = vmatprep.mubr.msk.f32.mxu0 %vm59_vm0, %v4531_v28 }
 0x1e0   :  { %v3612_v43 = vpop.f32.mrb[0].mxu1 }
 0x1e1   :  { %v3151_v44 = vpack.c.bf16 %v3612_v43, %v3612_v43  ;;  %v297_v45 = vpop.f32.mrb[1].mxu1 }
 0x1e2   :  { %v3150_v46 = vpack.c.bf16 %v297_v45, %v297_v45 }
 0x1e3   :  { %424 = vst.msk [vmem:[#allocation5 + $0x4] sm:$0xf] %vm422_vm1, %v3151_v44 }
 0x1e4   :  { %423 = vst.msk [vmem:[#allocation5] sm:$0xf] %vm422_vm1, %v3150_v46  ;;  %v3615_v47 = vpop.f32.mrb[2].mxu1 }
 0x1e5   :  { %v3153_v48 = vpack.c.bf16 %v3615_v47, %v3615_v47  ;;  %v307_v49 = vpop.f32.mrb[3].mxu1 }
 0x1e6   :  { %v3152_v51 = vpack.c.bf16 %v307_v49, %v307_v49 }
 0x1e7   :  { %426 = vst.msk [vmem:[#allocation5 + $0xc] sm:$0xf] %vm422_vm1, %v3153_v48 }
 0x1e8   :  { %425 = vst.msk [vmem:[#allocation5 + $0x8] sm:$0xf] %vm422_vm1, %v3152_v51  ;;  %v3618_v53 = vpop.f32.mrb[4].mxu1 }
 0x1e9   :  { %v3155_v54 = vpack.c.bf16 %v3618_v53, %v3618_v53  ;;  %v317_v56 = vpop.f32.mrb[5].mxu1 }
 0x1ea   :  { %v3154_v58 = vpack.c.bf16 %v317_v56, %v317_v56 }
 0x1eb   :  { %428 = vst.msk [vmem:[#allocation5 + $0x14] sm:$0xf] %vm422_vm1, %v3155_v54 }
 0x1ec   :  { %427 = vst.msk [vmem:[#allocation5 + $0x10] sm:$0xf] %vm422_vm1, %v3154_v58  ;;  %v3621_v59 = vpop.f32.mrb[6].mxu1 }
 0x1ed   :  { %v3157_v61 = vpack.c.bf16 %v3621_v59, %v3621_v59  ;;  %v327_v63 = vpop.f32.mrb[7].mxu1 }
 0x1ee   :  { %v3156_v0 = vpack.c.bf16 %v327_v63, %v327_v63 }
 0x1ef   :  { %430 = vst.msk [vmem:[#allocation5 + $0x1c] sm:$0xf] %vm422_vm1, %v3157_v61 }
 0x1f0   :  { %429 = vst.msk [vmem:[#allocation5 + $0x18] sm:$0xf] %vm422_vm1, %v3156_v0  ;;  %v3624_v2 = vpop.f32.mrb[8].mxu1 }
 0x1f1   :  { %v3159_v6 = vpack.c.bf16 %v3624_v2, %v3624_v2  ;;  %v337_v14 = vpop.f32.mrb[9].mxu1 }
 0x1f2   :  { %v3158_v15 = vpack.c.bf16 %v337_v14, %v337_v14 }
 0x1f3   :  { %432 = vst.msk [vmem:[#allocation5 + $0x24] sm:$0xf] %vm422_vm1, %v3159_v6 }
 0x1f4   :  { %431 = vst.msk [vmem:[#allocation5 + $0x20] sm:$0xf] %vm422_vm1, %v3158_v15  ;;  %v3627_v16 = vpop.f32.mrb[10].mxu1 }
 0x1f5   :  { %v3161_v17 = vpack.c.bf16 %v3627_v16, %v3627_v16  ;;  %v347_v18 = vpop.f32.mrb[11].mxu1 }
 0x1f6   :  { %v3160_v19 = vpack.c.bf16 %v347_v18, %v347_v18  ;;  %v1814_v18 = vld [vmem:[#allocation2 + $0x140] sm:$0xff] }
 0x1f7   :  { %434 = vst.msk [vmem:[#allocation5 + $0x2c] sm:$0xf] %vm422_vm1, %v3161_v17 }
 0x1f8   :  { %433 = vst.msk [vmem:[#allocation5 + $0x28] sm:$0xf] %vm422_vm1, %v3160_v19  ;;  %v3630_v20 = vpop.f32.mrb[12].mxu1  ;;  %v1815_v19 = vld [vmem:[#allocation2 + $0x148] sm:$0xff] }
 0x1f9   :  { %v3163_v21 = vpack.c.bf16 %v3630_v20, %v3630_v20  ;;  %v357_v22 = vpop.f32.mrb[13].mxu1  ;;  %v1816_v20 = vld [vmem:[#allocation2 + $0x150] sm:$0xff] }
 0x1fa   :  { %v3162_v23 = vpack.c.bf16 %v357_v22, %v357_v22  ;;  %v1818_v22 = vld [vmem:[#allocation2 + $0x160] sm:$0xff] }
 0x1fb   :  { %436 = vst.msk [vmem:[#allocation5 + $0x34] sm:$0xf] %vm422_vm1, %v3163_v21  ;;  %v1817_v21 = vld [vmem:[#allocation2 + $0x158] sm:$0xff] }
 0x1fc   :  { %435 = vst.msk [vmem:[#allocation5 + $0x30] sm:$0xf] %vm422_vm1, %v3162_v23  ;;  %v3677_v24 = vpop.f32.mrb[14].mxu1  ;;  %v1819_v23 = vld [vmem:[#allocation2 + $0x168] sm:$0xff] }
 0x1fd   :  { %v3165_v25 = vpack.c.bf16 %v3677_v24, %v3677_v24  ;;  %v641_v26 = vpop.f32.mrb[15].mxu1  ;;  %v1820_v24 = vld [vmem:[#allocation2 + $0x170] sm:$0xff] }
 0x1fe   :  { %v3164_v27 = vpack.c.bf16 %v641_v26, %v641_v26 }
 0x1ff   :  { %768 = vst.msk [vmem:[#allocation5 + $0x3c] sm:$0xf] %vm422_vm1, %v3165_v25  ;;  %v1821_v25 = vld [vmem:[#allocation2 + $0x178] sm:$0xff] }
 0x200   :  { %767 = vst.msk [vmem:[#allocation5 + $0x38] sm:$0xf] %vm422_vm1, %v3164_v27  ;;  %v3680_v29 = vpop.f32.mrb[16].mxu1 }
 0x201   :  { %v3167_v30 = vpack.c.bf16 %v3680_v29, %v3680_v29  ;;  %v651_v31 = vpop.f32.mrb[17].mxu1 }
 0x202   :  { %v3166_v32 = vpack.c.bf16 %v651_v31, %v651_v31  ;;  %v3742_v26 = vpop.f32.mrb[24].mxu0 }
 0x203   :  { %770 = vst.msk [vmem:[#allocation5 + $0x44] sm:$0xf] %vm422_vm1, %v3167_v30  ;;  %v3179_v27 = vpack.c.bf16 %v3742_v26, %v3742_v26  ;;  %v985_v29 = vpop.f32.mrb[25].mxu0  ;;  %v2164_v26 = vld [vmem:[#allocation2 + $0x1b0] sm:$0xff] }
 0x204   :  { %769 = vst.msk [vmem:[#allocation5 + $0x40] sm:$0xf] %vm422_vm1, %v3166_v32  ;;  %v3683_v33 = vpop.f32.mrb[18].mxu1  ;;  %v3178_v30 = vpack.c.bf16 %v985_v29, %v985_v29 }
 0x205   :  { %v3169_v34 = vpack.c.bf16 %v3683_v33, %v3683_v33  ;;  %v661_v35 = vpop.f32.mrb[19].mxu1  ;;  %1112 = vst.msk [vmem:[#allocation5 + $0x74] sm:$0xf] %vm422_vm1, %v3179_v27  ;;  %v2165_v27 = vld [vmem:[#allocation2 + $0x1b8] sm:$0xff] }
 0x206   :  { %v3168_v36 = vpack.c.bf16 %v661_v35, %v661_v35  ;;  %1111 = vst.msk [vmem:[#allocation5 + $0x70] sm:$0xf] %vm422_vm1, %v3178_v30  ;;  %v3745_v31 = vpop.f32.mrb[26].mxu0 }
 0x207   :  { %772 = vst.msk [vmem:[#allocation5 + $0x4c] sm:$0xf] %vm422_vm1, %v3169_v34  ;;  %v3181_v32 = vpack.c.bf16 %v3745_v31, %v3745_v31  ;;  %v995_v33 = vpop.f32.mrb[27].mxu0 }
 0x208   :  { %771 = vst.msk [vmem:[#allocation5 + $0x48] sm:$0xf] %vm422_vm1, %v3168_v36  ;;  %v3686_v37 = vpop.f32.mrb[20].mxu1  ;;  %v3180_v34 = vpack.c.bf16 %v995_v33, %v995_v33 }
 0x209   :  { %v3171_v38 = vpack.c.bf16 %v3686_v37, %v3686_v37  ;;  %v671_v39 = vpop.f32.mrb[21].mxu1  ;;  %1114 = vst.msk [vmem:[#allocation5 + $0x7c] sm:$0xf] %vm422_vm1, %v3181_v32 }
 0x20a   :  { %v3170_v40 = vpack.c.bf16 %v671_v39, %v671_v39  ;;  %1113 = vst.msk [vmem:[#allocation5 + $0x78] sm:$0xf] %vm422_vm1, %v3180_v34  ;;  %v3748_v35 = vpop.f32.mrb[28].mxu0 }
 0x20b   :  { %774 = vst.msk [vmem:[#allocation5 + $0x54] sm:$0xf] %vm422_vm1, %v3171_v38  ;;  %v3183_v36 = vpack.c.bf16 %v3748_v35, %v3748_v35  ;;  %v1005_v37 = vpop.f32.mrb[29].mxu0 }
 0x20c   :  { %773 = vst.msk [vmem:[#allocation5 + $0x50] sm:$0xf] %vm422_vm1, %v3170_v40  ;;  %v3689_v41 = vpop.f32.mrb[22].mxu1  ;;  %v3182_v38 = vpack.c.bf16 %v1005_v37, %v1005_v37 }
 0x20d   :  { %v3173_v42 = vpack.c.bf16 %v3689_v41, %v3689_v41  ;;  %v681_v43 = vpop.f32.mrb[23].mxu1  ;;  %1116 = vst.msk [vmem:[#allocation5 + $0x84] sm:$0xf] %vm422_vm1, %v3183_v36 }
 0x20e   :  { %v3172_v44 = vpack.c.bf16 %v681_v43, %v681_v43  ;;  %1115 = vst.msk [vmem:[#allocation5 + $0x80] sm:$0xf] %vm422_vm1, %v3182_v38  ;;  %v3751_v39 = vpop.f32.mrb[30].mxu0 }
 0x20f   :  { %776 = vst.msk [vmem:[#allocation5 + $0x5c] sm:$0xf] %vm422_vm1, %v3173_v42  ;;  %v3185_v40 = vpack.c.bf16 %v3751_v39, %v3751_v39  ;;  %v1015_v41 = vpop.f32.mrb[31].mxu0 }
 0x210   :  { %775 = vst.msk [vmem:[#allocation5 + $0x58] sm:$0xf] %vm422_vm1, %v3172_v44  ;;  %v3692_v45 = vpop.f32.mrb[24].mxu1  ;;  %v3184_v42 = vpack.c.bf16 %v1015_v41, %v1015_v41 }
 0x211   :  { %v3175_v46 = vpack.c.bf16 %v3692_v45, %v3692_v45  ;;  %v691_v47 = vpop.f32.mrb[25].mxu1  ;;  %1118 = vst.msk [vmem:[#allocation5 + $0x8c] sm:$0xf] %vm422_vm1, %v3185_v40 }
 0x212   :  { %v3174_v48 = vpack.c.bf16 %v691_v47, %v691_v47  ;;  %1117 = vst.msk [vmem:[#allocation5 + $0x88] sm:$0xf] %vm422_vm1, %v3184_v42  ;;  %v3754_v43 = vpop.f32.mrb[32].mxu0 }
 0x213   :  { %778 = vst.msk [vmem:[#allocation5 + $0x64] sm:$0xf] %vm422_vm1, %v3175_v46  ;;  %v3187_v44 = vpack.c.bf16 %v3754_v43, %v3754_v43  ;;  %v1025_v45 = vpop.f32.mrb[33].mxu0 }
 0x214   :  { %777 = vst.msk [vmem:[#allocation5 + $0x60] sm:$0xf] %vm422_vm1, %v3174_v48  ;;  %v3695_v49 = vpop.f32.mrb[26].mxu1  ;;  %v3186_v46 = vpack.c.bf16 %v1025_v45, %v1025_v45 }
 0x215   :  { %v3177_v51 = vpack.c.bf16 %v3695_v49, %v3695_v49  ;;  %v701_v53 = vpop.f32.mrb[27].mxu1  ;;  %1120 = vst.msk [vmem:[#allocation5 + $0x94] sm:$0xf] %vm422_vm1, %v3187_v44 }
 0x216   :  { %v3176_v54 = vpack.c.bf16 %v701_v53, %v701_v53  ;;  %1119 = vst.msk [vmem:[#allocation5 + $0x90] sm:$0xf] %vm422_vm1, %v3186_v46  ;;  %v3757_v47 = vpop.f32.mrb[34].mxu0 }
 0x217   :  { %780 = vst.msk [vmem:[#allocation5 + $0x6c] sm:$0xf] %vm422_vm1, %v3177_v51  ;;  %v1035_v48 = vpop.f32.mrb[35].mxu0  ;;  %v3189_v49 = vpack.c.bf16 %v3757_v47, %v3757_v47 }
 0x218   :  { %779 = vst.msk [vmem:[#allocation5 + $0x68] sm:$0xf] %vm422_vm1, %v3176_v54  ;;  %v3779_v56 = vpop.f32.mrb[28].mxu1  ;;  %v3188_v51 = vpack.c.bf16 %v1035_v48, %v1035_v48 }
 0x219   :  { %v1224_v58 = vpop.f32.mrb[29].mxu1  ;;  %1122 = vst.msk [vmem:[#allocation5 + $0x9c] sm:$0xf] %vm422_vm1, %v3189_v49 }
 0x21a   :  { %v4198_v59 = vpack.c.bf16 %v3779_v56, %v1224_v58  ;;  %1121 = vst.msk [vmem:[#allocation5 + $0x98] sm:$0xf] %vm422_vm1, %v3188_v51  ;;  %v3760_v53 = vpop.f32.mrb[36].mxu0 }
 0x21b   :  { %v1045_v54 = vpop.f32.mrb[37].mxu0  ;;  %v3191_v56 = vpack.c.bf16 %v3760_v53, %v3760_v53 }
 0x21c   :  { %v3782_v61 = vpop.f32.mrb[30].mxu1  ;;  %4199 = vmatprep.subr.bf16.mxu1 %v4198_v59  ;;  %v3190_v58 = vpack.c.bf16 %v1045_v54, %v1045_v54 }
 0x21d   :  { %v1234_v63 = vpop.f32.mrb[31].mxu1  ;;  %4201 = vmatpush3.bf16.msra.mxu1 %v4198_v59  ;;  %1124 = vst.msk [vmem:[#allocation5 + $0xa4] sm:$0xf] %vm422_vm1, %v3191_v56 }
 0x21e   :  { %v4202_v0 = vpack.c.bf16 %v3782_v61, %v1234_v63  ;;  %v3844_v59 = vpop.f32.mrb[38].mxu0  ;;  %1123 = vst.msk [vmem:[#allocation5 + $0xa0] sm:$0xf] %vm422_vm1, %v3190_v58 }
 0x21f   :  { %v1568_v61 = vpop.f32.mrb[39].mxu0 }
 0x220   :  { %v3785_v2 = vpop.f32.mrb[32].mxu1  ;;  %4203 = vmatprep.subr.bf16.mxu1 %v4202_v0  ;;  %v4230_v63 = vpack.c.bf16 %v3844_v59, %v1568_v61 }
 0x221   :  { %v1244_v6 = vpop.f32.mrb[33].mxu1  ;;  %4205 = vmatpush3.bf16.msra.mxu1 %v4202_v0 }
 0x222   :  { %v4206_v14 = vpack.c.bf16 %v3785_v2, %v1244_v6  ;;  %v3847_v0 = vpop.f32.mrb[40].mxu0  ;;  %4231 = vmatprep.subr.bf16.mxu0 %v4230_v63 }
 0x223   :  { %v1578_v2 = vpop.f32.mrb[41].mxu0  ;;  %4233 = vmatpush3.bf16.msra.mxu0 %v4230_v63 }
 0x224   :  { %v3788_v15 = vpop.f32.mrb[34].mxu1  ;;  %4207 = vmatprep.subr.bf16.mxu1 %v4206_v14  ;;  %v4234_v6 = vpack.c.bf16 %v3847_v0, %v1578_v2 }
 0x225   :  { %v1254_v16 = vpop.f32.mrb[35].mxu1  ;;  %4209 = vmatpush3.bf16.msra.mxu1 %v4206_v14 }
 0x226   :  { %v4210_v17 = vpack.c.bf16 %v3788_v15, %v1254_v16  ;;  %v3850_v14 = vpop.f32.mrb[42].mxu0  ;;  %4235 = vmatprep.subr.bf16.mxu0 %v4234_v6 }
 0x227   :  { %v1588_v15 = vpop.f32.mrb[43].mxu0  ;;  %4237 = vmatpush3.bf16.msra.mxu0 %v4234_v6 }
 0x228   :  { %4211 = vmatprep.subr.bf16.mxu1 %v4210_v17  ;;  %v4238_v16 = vpack.c.bf16 %v3850_v14, %v1588_v15 }
 0x229   :  { %4213 = vmatpush3.bf16.msra.mxu1 %v4210_v17 }
 0x22a   :  { %4247 = vmatprep.subr.bf16.mxu1 %v4465_v3  ;;  %v3853_v17 = vpop.f32.mrb[44].mxu0  ;;  %4239 = vmatprep.subr.bf16.mxu0 %v4238_v16 }
 0x22b   :  { %4241 = vmatpush3.bf16.msra.mxu0 %v4238_v16 }
 0x22c   :  { %3806 = vmatmul.mubr.msk.f32.vlgmr.msra.gmra.mrb[36].mxu1 %vm59_vm0, %v4548_v50 }
 0x22d   :  { %3808 = vmatprep.mubr.msk.f32.mxu1 %vm59_vm0, %v4553_v52  ;;  %4249 = vmatpush3.bf16.msra.mxu1 %v4465_v3 }
 0x22e   :  { %4251 = vmatprep.subr.bf16.mxu1 %v4470_v5 }
 0x230   :  { %3809 = vmatmul.mubr.msk.f32.gmra.mrb[38].mxu1 %vm59_vm0, %v4562_v55 }
 0x231   :  { %3811 = vmatprep.mubr.msk.f32.mxu1 %vm59_vm0, %v4567_v57  ;;  %4253 = vmatpush3.bf16.msra.mxu1 %v4470_v5 }
 0x232   :  { %4255 = vmatprep.subr.bf16.mxu1 %v4482_v9 }
 0x234   :  { %3812 = vmatmul.mubr.msk.f32.gmra.mrb[40].mxu1 %vm59_vm0, %v4576_v60 }
 0x235   :  { %3814 = vmatprep.mubr.msk.f32.mxu1 %vm59_vm0, %v4581_v62  ;;  %4257 = vmatpush3.bf16.msra.mxu1 %v4482_v9 }
 0x236   :  { %4259 = vmatprep.subr.bf16.mxu1 %v4492_v12 }
 0x238   :  { %3815 = vmatmul.mubr.msk.f32.gmra.mrb[42].mxu1 %vm59_vm0, %v4590_v1 }
 0x239   :  { %3817 = vmatprep.mubr.msk.f32.mxu1 %vm59_vm0, %v4595_v4  ;;  %4261 = vmatpush3.bf16.msra.mxu1 %v4492_v12 }
 0x23c   :  { %3818 = vmatmul.mubr.msk.f32.gmra.mrb[44].mxu1 %vm59_vm0, %v4604_v7 }
 0x23d   :  { %3820 = vmatprep.mubr.msk.f32.mxu1 %vm59_vm0, %v4609_v8 }
 0x240   :  { %3821 = vmatmul.mubr.msk.f32.gmra.mrb[46].mxu1 %vm59_vm0, %v4619_v10 }
 0x241   :  { %3823 = vmatprep.mubr.msk.f32.mxu1 %vm59_vm0, %v4624_v11 }
 0x244   :  { %3824 = vmatmul.mubr.msk.f32.gmra.mrb[48].mxu1 %vm59_vm0, %v4633_v13 }
 0x245   :  { %3907 = vmatprep.mubr.msk.f32.mxu1 %vm59_vm0, %v1814_v18  ;;  %v1598_v18 = vpop.f32.mrb[45].mxu0 }
 0x248   :  { %3908 = vmatmul.mubr.msk.f32.vlgmr.msra.gmra.mrb[50].mxu1 %vm59_vm0, %v1815_v19  ;;  %v4242_v19 = vpack.c.bf16 %v3853_v17, %v1598_v18 }
 0x249   :  { %3910 = vmatprep.mubr.msk.f32.mxu1 %vm59_vm0, %v1816_v20  ;;  %v2158_v20 = vld [vmem:[#allocation2 + $0x180] sm:$0xff] }
 0x24a   :  { %4243 = vmatprep.subr.bf16.mxu0 %v4242_v19 }
 0x24b   :  { %4245 = vmatpush3.bf16.msra.mxu0 %v4242_v19 }
 0x24c   :  { %3911 = vmatmul.mubr.msk.f32.gmra.mrb[52].mxu1 %vm59_vm0, %v1817_v21  ;;  %4279 = vmatprep.subr.bf16.mxu0 %v4465_v3  ;;  %v2159_v21 = vld [vmem:[#allocation2 + $0x188] sm:$0xff] }
 0x24d   :  { %3913 = vmatprep.mubr.msk.f32.mxu1 %vm59_vm0, %v1818_v22  ;;  %v2160_v22 = vld [vmem:[#allocation2 + $0x190] sm:$0xff] }
 0x24e   :  { %3871 = vmatmul.mubr.msk.f32.vlgmr.msra.gmra.mrb[46].mxu0 %vm59_vm0, %v4548_v50 }
 0x24f   :  { %3873 = vmatprep.mubr.msk.f32.mxu0 %vm59_vm0, %v4553_v52  ;;  %4281 = vmatpush3.bf16.msra.mxu0 %v4465_v3 }
 0x250   :  { %3914 = vmatmul.mubr.msk.f32.gmra.mrb[54].mxu1 %vm59_vm0, %v1819_v23  ;;  %4283 = vmatprep.subr.bf16.mxu0 %v4470_v5  ;;  %v2161_v23 = vld [vmem:[#allocation2 + $0x198] sm:$0xff] }
 0x251   :  { %3916 = vmatprep.mubr.msk.f32.mxu1 %vm59_vm0, %v1820_v24  ;;  %v2162_v24 = vld [vmem:[#allocation2 + $0x1a0] sm:$0xff] }
 0x252   :  { %3874 = vmatmul.mubr.msk.f32.gmra.mrb[48].mxu0 %vm59_vm0, %v4562_v55 }
 0x253   :  { %3876 = vmatprep.mubr.msk.f32.mxu0 %vm59_vm0, %v4567_v57  ;;  %4285 = vmatpush3.bf16.msra.mxu0 %v4470_v5 }
 0x254   :  { %3917 = vmatmul.mubr.msk.f32.gmra.mrb[56].mxu1 %vm59_vm0, %v1821_v25  ;;  %4287 = vmatprep.subr.bf16.mxu0 %v4482_v9  ;;  %v2163_v25 = vld [vmem:[#allocation2 + $0x1a8] sm:$0xff] }
 0x255   :  { %3935 = vmatprep.mubr.msk.f32.mxu1 %vm59_vm0, %v4531_v28 }
 0x256   :  { %3877 = vmatmul.mubr.msk.f32.gmra.mrb[50].mxu0 %vm59_vm0, %v4576_v60 }
 0x257   :  { %3879 = vmatprep.mubr.msk.f32.mxu0 %vm59_vm0, %v4581_v62  ;;  %4289 = vmatpush3.bf16.msra.mxu0 %v4482_v9 }
 0x258   :  { %4291 = vmatprep.subr.bf16.mxu0 %v4492_v12 }
 0x25a   :  { %3880 = vmatmul.mubr.msk.f32.gmra.mrb[52].mxu0 %vm59_vm0, %v4590_v1 }
 0x25b   :  { %3882 = vmatprep.mubr.msk.f32.mxu0 %vm59_vm0, %v4595_v4  ;;  %4293 = vmatpush3.bf16.msra.mxu0 %v4492_v12 }
 0x25e   :  { %3883 = vmatmul.mubr.msk.f32.gmra.mrb[54].mxu0 %vm59_vm0, %v4604_v7 }
 0x25f   :  { %3885 = vmatprep.mubr.msk.f32.mxu0 %vm59_vm0, %v4609_v8 }
 0x262   :  { %3886 = vmatmul.mubr.msk.f32.gmra.mrb[56].mxu0 %vm59_vm0, %v4619_v10 }
 0x263   :  { %3888 = vmatprep.mubr.msk.f32.mxu0 %vm59_vm0, %v4624_v11 }
 0x266   :  { %3889 = vmatmul.mubr.msk.f32.gmra.mrb[58].mxu0 %vm59_vm0, %v4633_v13 }
 0x267   :  { %3972 = vmatprep.mubr.msk.f32.mxu0 %vm59_vm0, %v2158_v20 }
 0x26a   :  { %3973 = vmatmul.mubr.msk.f32.vlgmr.msra.gmra.mrb[60].mxu0 %vm59_vm0, %v2159_v21 }
 0x26b   :  { %3975 = vmatprep.mubr.msk.f32.mxu0 %vm59_vm0, %v2160_v22 }
 0x26e   :  { %3976 = vmatmul.mubr.msk.f32.gmra.mrb[62].mxu0 %vm59_vm0, %v2161_v23 }
 0x26f   :  { %3978 = vmatprep.mubr.msk.f32.mxu0 %vm59_vm0, %v2162_v24 }
 0x272   :  { %3979 = vmatmul.mubr.msk.f32.gmra.mrb[64].mxu0 %vm59_vm0, %v2163_v25 }
 0x273   :  { %3981 = vmatprep.mubr.msk.f32.mxu0 %vm59_vm0, %v2164_v26 }
 0x276   :  { %3982 = vmatmul.mubr.msk.f32.gmra.mrb[66].mxu0 %vm59_vm0, %v2165_v27 }
 0x277   :  { %4000 = vmatprep.mubr.msk.f32.mxu0 %vm59_vm0, %v4531_v28 }
 0x2ff   :  { %v3807_v29 = vpop.f32.mrb[36].mxu1 }
 0x300   :  { %v3193_v30 = vpack.c.bf16 %v3807_v29, %v3807_v29  ;;  %v1329_v31 = vpop.f32.mrb[37].mxu1 }
 0x301   :  { %v3192_v32 = vpack.c.bf16 %v1329_v31, %v1329_v31 }
 0x302   :  { %1456 = vst.msk [vmem:[#allocation5 + $0xac] sm:$0xf] %vm422_vm1, %v3193_v30 }
 0x303   :  { %1455 = vst.msk [vmem:[#allocation5 + $0xa8] sm:$0xf] %vm422_vm1, %v3192_v32  ;;  %v3810_v33 = vpop.f32.mrb[38].mxu1 }
 0x304   :  { %v3195_v34 = vpack.c.bf16 %v3810_v33, %v3810_v33  ;;  %v1339_v35 = vpop.f32.mrb[39].mxu1 }
 0x305   :  { %v3194_v36 = vpack.c.bf16 %v1339_v35, %v1339_v35 }
 0x306   :  { %1458 = vst.msk [vmem:[#allocation5 + $0xb4] sm:$0xf] %vm422_vm1, %v3195_v34 }
 0x307   :  { %1457 = vst.msk [vmem:[#allocation5 + $0xb0] sm:$0xf] %vm422_vm1, %v3194_v36  ;;  %v3813_v37 = vpop.f32.mrb[40].mxu1 }
 0x308   :  { %v3197_v38 = vpack.c.bf16 %v3813_v37, %v3813_v37  ;;  %v1349_v39 = vpop.f32.mrb[41].mxu1 }
 0x309   :  { %v3196_v28 = vpack.c.bf16 %v1349_v39, %v1349_v39 }
 0x30a   :  { %1460 = vst.msk [vmem:[#allocation5 + $0xbc] sm:$0xf] %vm422_vm1, %v3197_v38 }
 0x30b   :  { %1459 = vst.msk [vmem:[#allocation5 + $0xb8] sm:$0xf] %vm422_vm1, %v3196_v28  ;;  %v3816_v40 = vpop.f32.mrb[42].mxu1 }
 0x30c   :  { %v3199_v41 = vpack.c.bf16 %v3816_v40, %v3816_v40  ;;  %v1359_v42 = vpop.f32.mrb[43].mxu1 }
 0x30d   :  { %v3198_v43 = vpack.c.bf16 %v1359_v42, %v1359_v42 }
 0x30e   :  { %1462 = vst.msk [vmem:[#allocation5 + $0xc4] sm:$0xf] %vm422_vm1, %v3199_v41 }
 0x30f   :  { %1461 = vst.msk [vmem:[#allocation5 + $0xc0] sm:$0xf] %vm422_vm1, %v3198_v43  ;;  %v3819_v44 = vpop.f32.mrb[44].mxu1 }
 0x310   :  { %v3201_v45 = vpack.c.bf16 %v3819_v44, %v3819_v44  ;;  %v1369_v46 = vpop.f32.mrb[45].mxu1 }
 0x311   :  { %v3200_v47 = vpack.c.bf16 %v1369_v46, %v1369_v46 }
 0x312   :  { %1464 = vst.msk [vmem:[#allocation5 + $0xcc] sm:$0xf] %vm422_vm1, %v3201_v45 }
 0x313   :  { %1463 = vst.msk [vmem:[#allocation5 + $0xc8] sm:$0xf] %vm422_vm1, %v3200_v47  ;;  %v3822_v48 = vpop.f32.mrb[46].mxu1 }
 0x314   :  { %v3203_v49 = vpack.c.bf16 %v3822_v48, %v3822_v48  ;;  %v1379_v51 = vpop.f32.mrb[47].mxu1 }
 0x315   :  { %v3202_v53 = vpack.c.bf16 %v1379_v51, %v1379_v51 }
 0x316   :  { %1466 = vst.msk [vmem:[#allocation5 + $0xd4] sm:$0xf] %vm422_vm1, %v3203_v49 }
 0x317   :  { %1465 = vst.msk [vmem:[#allocation5 + $0xd0] sm:$0xf] %vm422_vm1, %v3202_v53  ;;  %v3825_v54 = vpop.f32.mrb[48].mxu1 }
 0x318   :  { %v3205_v56 = vpack.c.bf16 %v3825_v54, %v3825_v54  ;;  %v1389_v58 = vpop.f32.mrb[49].mxu1  ;;  %v4931_v54 = vld [vmem:[%s5098_s0 + $0x8] sm:$0xff] }
 0x319   :  { %v3204_v59 = vpack.c.bf16 %v1389_v58, %v1389_v58  ;;  %v4945_v58 = vld [vmem:[%s5098_s0 + $0x18] sm:$0xff] }
 0x31a   :  { %1468 = vst.msk [vmem:[#allocation5 + $0xdc] sm:$0xf] %vm422_vm1, %v3205_v56  ;;  %v4938_v56 = vld [vmem:[%s5098_s0 + $0x10] sm:$0xff] }
 0x31b   :  { %1467 = vst.msk [vmem:[#allocation5 + $0xd8] sm:$0xf] %vm422_vm1, %v3204_v59  ;;  %v3909_v61 = vpop.f32.mrb[50].mxu1  ;;  %v4952_v59 = vld [vmem:[%s5098_s0 + $0x20] sm:$0xff] }
 0x31c   :  { %v1912_v63 = vpop.f32.mrb[51].mxu1 }
 0x31d   :  { %v4262_v0 = vpack.c.bf16 %v3909_v61, %v1912_v63  ;;  %v4959_v61 = vld [vmem:[%s5098_s0 + $0x28] sm:$0xff]  ;;  %v4361_v63 = vld [vmem:[%s5098_s0 + $0x30] sm:$0xff] }
 0x31f   :  { %v3912_v2 = vpop.f32.mrb[52].mxu1  ;;  %4263 = vmatprep.subr.bf16.mxu1 %v4262_v0 }
 0x320   :  { %v1922_v6 = vpop.f32.mrb[53].mxu1  ;;  %4265 = vmatpush3.bf16.msra.mxu1 %v4262_v0  ;;  %v4970_v0 = vld [vmem:[%s5098_s0 + $0x38] sm:$0xff] }
 0x321   :  { %v4266_v14 = vpack.c.bf16 %v3912_v2, %v1922_v6  ;;  %v4977_v2 = vld [vmem:[%s5098_s0 + $0x40] sm:$0xff]  ;;  %v4984_v6 = vld [vmem:[%s5098_s0 + $0x48] sm:$0xff] }
 0x323   :  { %v3915_v15 = vpop.f32.mrb[54].mxu1  ;;  %4267 = vmatprep.subr.bf16.mxu1 %v4266_v14 }
 0x324   :  { %v1932_v16 = vpop.f32.mrb[55].mxu1  ;;  %4269 = vmatpush3.bf16.msra.mxu1 %v4266_v14  ;;  %v4991_v14 = vld [vmem:[%s5098_s0 + $0x50] sm:$0xff] }
 0x325   :  { %v4270_v17 = vpack.c.bf16 %v3915_v15, %v1932_v16  ;;  %v4998_v15 = vld [vmem:[%s5098_s0 + $0x58] sm:$0xff]  ;;  %v5005_v16 = vld [vmem:[%s5098_s0 + $0x60] sm:$0xff] }
 0x327   :  { %v3918_v18 = vpop.f32.mrb[56].mxu1  ;;  %4271 = vmatprep.subr.bf16.mxu1 %v4270_v17 }
 0x328   :  { %v1942_v19 = vpop.f32.mrb[57].mxu1  ;;  %4273 = vmatpush3.bf16.msra.mxu1 %v4270_v17  ;;  %v5012_v17 = vld [vmem:[%s5098_s0 + $0x68] sm:$0xff] }
 0x329   :  { %v4274_v20 = vpack.c.bf16 %v3918_v18, %v1942_v19  ;;  %v4369_v18 = vld [vmem:[%s5098_s0] sm:$0xff]  ;;  %s4421_s0 = smov [#allocation5]  }
 0x32a   :  { %s2850_s12 = sshll.u32 %s4421_s0, 4  ;;  %s2851_s12 = int_to_ptr.vmem [resolvable:$true] %s2850_s12 }
 0x32b   :  { %4275 = vmatprep.subr.bf16.mxu1 %v4274_v20  ;;  %s4392_s13 = scalar_lea.vmem %s2851_s12, 7168  ;;  %p4397_p9 = scmp.lt.s32.totalorder %s2851_s12, %s2851_s12 }
 0x32c   :  { %4277 = vmatpush3.bf16.msra.mxu1 %v4274_v20  ;;  %p4393_p8 = scmp.ne.s32.totalorder %s2851_s12, %s4392_s13  ;;  %p4398_p10 = scmp.lt.s32.totalorder %s4392_s13, %s4392_s13 }
 0x32d   :  { %4311 = vmatprep.subr.bf16.mxu1 %v4465_v3 }
 0x32e   :  { %p4399_p11 = por %p4398_p10, %p4397_p9 }
 0x32f   :  { %3936 = vmatmul.mubr.msk.f32.vlgmr.msra.gmra.mrb[58].mxu1 %vm59_vm0, %v4548_v50  ;;  %v2506_v50 = vld [vmem:[#allocation2 + $0x1e0] sm:$0xff] }
 0x330   :  { %3938 = vmatprep.mubr.msk.f32.mxu1 %vm59_vm0, %v4553_v52  ;;  %4313 = vmatpush3.bf16.msra.mxu1 %v4465_v3  ;;  %v2502_v3 = vld [vmem:[#allocation2 + $0x1c0] sm:$0xff]  ;;  %v2507_v52 = vld [vmem:[#allocation2 + $0x1e8] sm:$0xff]  ;;  %p4400_p12 = pnand %p4399_p11, %p4393_p8 }
 0x331   :  { %4315 = vmatprep.subr.bf16.mxu1 %v4470_v5 }
 0x333   :  { %3939 = vmatmul.mubr.msk.f32.gmra.mrb[60].mxu1 %vm59_vm0, %v4562_v55  ;;  %v2508_v55 = vld [vmem:[#allocation2 + $0x1f0] sm:$0xff] }
 0x334   :  { %3941 = vmatprep.mubr.msk.f32.mxu1 %vm59_vm0, %v4567_v57  ;;  %4317 = vmatpush3.bf16.msra.mxu1 %v4470_v5  ;;  %v2503_v5 = vld [vmem:[#allocation2 + $0x1c8] sm:$0xff]  ;;  %v2509_v57 = vld [vmem:[#allocation2 + $0x1f8] sm:$0xff] }
 0x335   :  { %4319 = vmatprep.subr.bf16.mxu1 %v4482_v9 }
 0x337   :  { %3942 = vmatmul.mubr.msk.f32.gmra.mrb[62].mxu1 %vm59_vm0, %v4576_v60  ;;  %v3872_v60 = vpop.f32.mrb[46].mxu0 }
 0x338   :  { %3944 = vmatprep.mubr.msk.f32.mxu1 %vm59_vm0, %v4581_v62  ;;  %4321 = vmatpush3.bf16.msra.mxu1 %v4482_v9  ;;  %v2504_v9 = vld [vmem:[#allocation2 + $0x1d0] sm:$0xff] }
 0x339   :  { %4323 = vmatprep.subr.bf16.mxu1 %v4492_v12 }
 0x33b   :  { %3945 = vmatmul.mubr.msk.f32.gmra.mrb[64].mxu1 %vm59_vm0, %v4590_v1  ;;  %v3207_v1 = vpack.c.bf16 %v3872_v60, %v3872_v60 }
 0x33c   :  { %3947 = vmatprep.mubr.msk.f32.mxu1 %vm59_vm0, %v4595_v4  ;;  %4325 = vmatpush3.bf16.msra.mxu1 %v4492_v12  ;;  %v2505_v12 = vld [vmem:[#allocation2 + $0x1d8] sm:$0xff]  ;;  %v1673_v4 = vpop.f32.mrb[47].mxu0 }
 0x33d   :  { %1800 = vst.msk [vmem:[#allocation5 + $0xe4] sm:$0xf] %vm422_vm1, %v3207_v1 }
 0x33f   :  { %3948 = vmatmul.mubr.msk.f32.gmra.mrb[66].mxu1 %vm59_vm0, %v4604_v7  ;;  %v3206_v7 = vpack.c.bf16 %v1673_v4, %v1673_v4 }
 0x340   :  { %3950 = vmatprep.mubr.msk.f32.mxu1 %vm59_vm0, %v4609_v8  ;;  %v3875_v8 = vpop.f32.mrb[48].mxu0 }
 0x341   :  { %1799 = vst.msk [vmem:[#allocation5 + $0xe0] sm:$0xf] %vm422_vm1, %v3206_v7 }
 0x343   :  { %3951 = vmatmul.mubr.msk.f32.gmra.mrb[68].mxu1 %vm59_vm0, %v4619_v10  ;;  %v3209_v10 = vpack.c.bf16 %v3875_v8, %v3875_v8 }
 0x344   :  { %3953 = vmatprep.mubr.msk.f32.mxu1 %vm59_vm0, %v4624_v11  ;;  %v1683_v11 = vpop.f32.mrb[49].mxu0 }
 0x345   :  { %1802 = vst.msk [vmem:[#allocation5 + $0xec] sm:$0xf] %vm422_vm1, %v3209_v10  ;;  %v3878_v21 = vpop.f32.mrb[50].mxu0 }
 0x346   :  { %v3211_v22 = vpack.c.bf16 %v3878_v21, %v3878_v21  ;;  %v1693_v23 = vpop.f32.mrb[51].mxu0 }
 0x347   :  { %3954 = vmatmul.mubr.msk.f32.gmra.mrb[70].mxu1 %vm59_vm0, %v4633_v13  ;;  %v3208_v13 = vpack.c.bf16 %v1683_v11, %v1683_v11  ;;  %v3881_v24 = vpop.f32.mrb[52].mxu0 }
 0x348   :  { %4037 = vmatprep.mubr.msk.f32.mxu1 %vm59_vm0, %v2502_v3  ;;  %1804 = vst.msk [vmem:[#allocation5 + $0xf4] sm:$0xf] %vm422_vm1, %v3211_v22  ;;  %v3213_v25 = vpack.c.bf16 %v3881_v24, %v3881_v24  ;;  %v1703_v26 = vpop.f32.mrb[53].mxu0 }
 0x349   :  { %1801 = vst.msk [vmem:[#allocation5 + $0xe8] sm:$0xf] %vm422_vm1, %v3208_v13  ;;  %v3212_v27 = vpack.c.bf16 %v1703_v26, %v1703_v26  ;;  %v3884_v29 = vpop.f32.mrb[54].mxu0 }
 0x34a   :  { %1806 = vst.msk [vmem:[#allocation5 + $0xfc] sm:$0xf] %vm422_vm1, %v3213_v25  ;;  %v3215_v30 = vpack.c.bf16 %v3884_v29, %v3884_v29  ;;  %v1713_v31 = vpop.f32.mrb[55].mxu0 }
 0x34b   :  { %4038 = vmatmul.mubr.msk.f32.vlgmr.msra.gmra.mrb[72].mxu1 %vm59_vm0, %v2503_v5  ;;  %1805 = vst.msk [vmem:[#allocation5 + $0xf8] sm:$0xf] %vm422_vm1, %v3212_v27  ;;  %v3214_v32 = vpack.c.bf16 %v1713_v31, %v1713_v31  ;;  %v3887_v33 = vpop.f32.mrb[56].mxu0 }
 0x34c   :  { %4040 = vmatprep.mubr.msk.f32.mxu1 %vm59_vm0, %v2504_v9  ;;  %1808 = vst.msk [vmem:[#allocation5 + $0x104] sm:$0xf] %vm422_vm1, %v3215_v30  ;;  %v1723_v34 = vpop.f32.mrb[57].mxu0  ;;  %v3217_v35 = vpack.c.bf16 %v3887_v33, %v3887_v33 }
 0x34d   :  { %1807 = vst.msk [vmem:[#allocation5 + $0x100] sm:$0xf] %vm422_vm1, %v3214_v32  ;;  %v3216_v36 = vpack.c.bf16 %v1723_v34, %v1723_v34  ;;  %v3890_v37 = vpop.f32.mrb[58].mxu0 }
 0x34e   :  { %1810 = vst.msk [vmem:[#allocation5 + $0x10c] sm:$0xf] %vm422_vm1, %v3217_v35  ;;  %v1733_v38 = vpop.f32.mrb[59].mxu0  ;;  %v3219_v39 = vpack.c.bf16 %v3890_v37, %v3890_v37 }
 0x34f   :  { %4041 = vmatmul.mubr.msk.f32.gmra.mrb[74].mxu1 %vm59_vm0, %v2505_v12  ;;  %1809 = vst.msk [vmem:[#allocation5 + $0x108] sm:$0xf] %vm422_vm1, %v3216_v36  ;;  %v3218_v28 = vpack.c.bf16 %v1733_v38, %v1733_v38  ;;  %v3974_v40 = vpop.f32.mrb[60].mxu0 }
 0x350   :  { %4043 = vmatprep.mubr.msk.f32.mxu1 %vm59_vm0, %v2506_v50  ;;  %1812 = vst.msk [vmem:[#allocation5 + $0x114] sm:$0xf] %vm422_vm1, %v3219_v39  ;;  %v2256_v41 = vpop.f32.mrb[61].mxu0 }
 0x351   :  { %1811 = vst.msk [vmem:[#allocation5 + $0x110] sm:$0xf] %vm422_vm1, %v3218_v28  ;;  %v4294_v42 = vpack.c.bf16 %v3974_v40, %v2256_v41  ;;  %v3977_v43 = vpop.f32.mrb[62].mxu0 }
 0x352   :  { %v2266_v44 = vpop.f32.mrb[63].mxu0 }
 0x353   :  { %4044 = vmatmul.mubr.msk.f32.gmra.mrb[76].mxu1 %vm59_vm0, %v2507_v52  ;;  %4295 = vmatprep.subr.bf16.mxu0 %v4294_v42  ;;  %v4298_v45 = vpack.c.bf16 %v3977_v43, %v2266_v44  ;;  %v3980_v46 = vpop.f32.mrb[64].mxu0 }
 0x354   :  { %4046 = vmatprep.mubr.msk.f32.mxu1 %vm59_vm0, %v2508_v55  ;;  %4297 = vmatpush3.bf16.msra.mxu0 %v4294_v42  ;;  %v2276_v47 = vpop.f32.mrb[65].mxu0 }
 0x355   :  { %4299 = vmatprep.subr.bf16.mxu0 %v4298_v45  ;;  %v4302_v48 = vpack.c.bf16 %v3980_v46, %v2276_v47  ;;  %v3983_v49 = vpop.f32.mrb[66].mxu0 }
 0x356   :  { %v2286_v51 = vpop.f32.mrb[67].mxu0 }
 0x357   :  { %4047 = vmatmul.mubr.msk.f32.gmra.mrb[78].mxu1 %vm59_vm0, %v2509_v57  ;;  %v4306_v53 = vpack.c.bf16 %v3983_v49, %v2286_v51 }
 0x358   :  { %4074 = vmatprep.mubr.msk.f32.mxu1 %vm59_vm0, %v4581_v62  ;;  %v3210_v62 = vpack.c.bf16 %v1693_v23, %v1693_v23  ;;  %4301 = vmatpush3.bf16.msra.mxu0 %v4298_v45 }
 0x359   :  { %4303 = vmatprep.subr.bf16.mxu0 %v4302_v48 }
 0x35a   :  { %1803 = vst.msk [vmem:[#allocation5 + $0xf0] sm:$0xf] %vm422_vm1, %v3210_v62 }
 0x35c   :  { %4305 = vmatpush3.bf16.msra.mxu0 %v4302_v48 }
 0x35d   :  { %4307 = vmatprep.subr.bf16.mxu0 %v4306_v53 }
 0x360   :  { %4309 = vmatpush3.bf16.msra.mxu0 %v4306_v53 }
 0x363   :  { %4001 = vmatmul.mubr.msk.f32.vlgmr.msra.gmra.mrb[68].mxu0 %vm59_vm0, %v4931_v54 }
 0x364   :  { %4003 = vmatprep.mubr.msk.f32.mxu0 %vm59_vm0, %v4938_v56 }
 0x367   :  { %4004 = vmatmul.mubr.msk.f32.gmra.mrb[70].mxu0 %vm59_vm0, %v4945_v58 }
 0x368   :  { %4006 = vmatprep.mubr.msk.f32.mxu0 %vm59_vm0, %v4952_v59 }
 0x36b   :  { %4007 = vmatmul.mubr.msk.f32.gmra.mrb[72].mxu0 %vm59_vm0, %v4959_v61 }
 0x36c   :  { %4009 = vmatprep.mubr.msk.f32.mxu0 %vm59_vm0, %v4361_v63 }
 0x36f   :  { %4010 = vmatmul.mubr.msk.f32.gmra.mrb[74].mxu0 %vm59_vm0, %v4970_v0 }
 0x370   :  { %4012 = vmatprep.mubr.msk.f32.mxu0 %vm59_vm0, %v4977_v2 }
 0x373   :  { %4013 = vmatmul.mubr.msk.f32.gmra.mrb[76].mxu0 %vm59_vm0, %v4984_v6 }
 0x374   :  { %4015 = vmatprep.mubr.msk.f32.mxu0 %vm59_vm0, %v4991_v14 }
 0x377   :  { %4016 = vmatmul.mubr.msk.f32.gmra.mrb[78].mxu0 %vm59_vm0, %v4998_v15 }
 0x378   :  { %4018 = vmatprep.mubr.msk.f32.mxu0 %vm59_vm0, %v5005_v16 }
 0x37b   :  { %4019 = vmatmul.mubr.msk.f32.gmra.mrb[80].mxu0 %vm59_vm0, %v5012_v17 }
 0x37c   :  { %4065 = vmatprep.mubr.msk.f32.mxu0 %vm59_vm0, %v4369_v18 }
 0x402   :  { %v3937_v19 = vpop.f32.mrb[58].mxu1 }
 0x403   :  { %v3221_v20 = vpack.c.bf16 %v3937_v19, %v3937_v19  ;;  %v2017_v3 = vpop.f32.mrb[59].mxu1 }
 0x404   :  { %v3220_v5 = vpack.c.bf16 %v2017_v3, %v2017_v3 }
 0x405   :  { %2144 = vst.msk [vmem:[#allocation5 + $0x11c] sm:$0xf] %vm422_vm1, %v3221_v20 }
 0x406   :  { %2143 = vst.msk [vmem:[#allocation5 + $0x118] sm:$0xf] %vm422_vm1, %v3220_v5  ;;  %v3940_v9 = vpop.f32.mrb[60].mxu1 }
 0x407   :  { %v3223_v12 = vpack.c.bf16 %v3940_v9, %v3940_v9  ;;  %v2027_v50 = vpop.f32.mrb[61].mxu1 }
 0x408   :  { %v3222_v52 = vpack.c.bf16 %v2027_v50, %v2027_v50 }
 0x409   :  { %2146 = vst.msk [vmem:[#allocation5 + $0x124] sm:$0xf] %vm422_vm1, %v3223_v12 }
 0x40a   :  { %2145 = vst.msk [vmem:[#allocation5 + $0x120] sm:$0xf] %vm422_vm1, %v3222_v52  ;;  %v3943_v55 = vpop.f32.mrb[62].mxu1 }
 0x40b   :  { %v3225_v57 = vpack.c.bf16 %v3943_v55, %v3943_v55  ;;  %v2037_v60 = vpop.f32.mrb[63].mxu1 }
 0x40c   :  { %v3224_v1 = vpack.c.bf16 %v2037_v60, %v2037_v60 }
 0x40d   :  { %2148 = vst.msk [vmem:[#allocation5 + $0x12c] sm:$0xf] %vm422_vm1, %v3225_v57 }
 0x40e   :  { %2147 = vst.msk [vmem:[#allocation5 + $0x128] sm:$0xf] %vm422_vm1, %v3224_v1  ;;  %v3946_v4 = vpop.f32.mrb[64].mxu1 }
 0x40f   :  { %v3227_v7 = vpack.c.bf16 %v3946_v4, %v3946_v4  ;;  %v2047_v8 = vpop.f32.mrb[65].mxu1 }
 0x410   :  { %v3226_v10 = vpack.c.bf16 %v2047_v8, %v2047_v8 }
 0x411   :  { %2150 = vst.msk [vmem:[#allocation5 + $0x134] sm:$0xf] %vm422_vm1, %v3227_v7 }
 0x412   :  { %2149 = vst.msk [vmem:[#allocation5 + $0x130] sm:$0xf] %vm422_vm1, %v3226_v10  ;;  %v3949_v11 = vpop.f32.mrb[66].mxu1 }
 0x413   :  { %v3229_v13 = vpack.c.bf16 %v3949_v11, %v3949_v11  ;;  %v2057_v21 = vpop.f32.mrb[67].mxu1 }
 0x414   :  { %v3228_v22 = vpack.c.bf16 %v2057_v21, %v2057_v21 }
 0x415   :  { %2152 = vst.msk [vmem:[#allocation5 + $0x13c] sm:$0xf] %vm422_vm1, %v3229_v13 }
 0x416   :  { %2151 = vst.msk [vmem:[#allocation5 + $0x138] sm:$0xf] %vm422_vm1, %v3228_v22  ;;  %v3952_v23 = vpop.f32.mrb[68].mxu1 }
 0x417   :  { %v3231_v62 = vpack.c.bf16 %v3952_v23, %v3952_v23  ;;  %v2067_v24 = vpop.f32.mrb[69].mxu1 }
 0x418   :  { %v3230_v25 = vpack.c.bf16 %v2067_v24, %v2067_v24 }
 0x419   :  { %2154 = vst.msk [vmem:[#allocation5 + $0x144] sm:$0xf] %vm422_vm1, %v3231_v62 }
 0x41a   :  { %2153 = vst.msk [vmem:[#allocation5 + $0x140] sm:$0xf] %vm422_vm1, %v3230_v25  ;;  %v3955_v26 = vpop.f32.mrb[70].mxu1 }
 0x41b   :  { %v3233_v27 = vpack.c.bf16 %v3955_v26, %v3955_v26  ;;  %v2077_v29 = vpop.f32.mrb[71].mxu1 }
 0x41c   :  { %v3232_v30 = vpack.c.bf16 %v2077_v29, %v2077_v29 }
 0x41d   :  { %2156 = vst.msk [vmem:[#allocation5 + $0x14c] sm:$0xf] %vm422_vm1, %v3233_v27 }
 0x41e   :  { %2155 = vst.msk [vmem:[#allocation5 + $0x148] sm:$0xf] %vm422_vm1, %v3232_v30  ;;  %v4039_v31 = vpop.f32.mrb[72].mxu1 }
 0x41f   :  { %v2600_v32 = vpop.f32.mrb[73].mxu1 }
 0x420   :  { %v4326_v33 = vpack.c.bf16 %v4039_v31, %v2600_v32 }
 0x422   :  { %4327 = vmatprep.subr.bf16.mxu0 %v4326_v33  ;;  %4342 = vmatprep.subr.bf16.mxu1 %v4326_v33  ;;  %v4042_v34 = vpop.f32.mrb[74].mxu1 }
 0x423   :  { %4329 = vmatpush3.bf16.msra.mxu0 %v4326_v33  ;;  %4346 = vmatpush3.bf16.msra.mxu1 %v4326_v33  ;;  %v2610_v35 = vpop.f32.mrb[75].mxu1 }
 0x424   :  { %v4330_v36 = vpack.c.bf16 %v4042_v34, %v2610_v35 }
 0x426   :  { %4331 = vmatprep.subr.bf16.mxu0 %v4330_v36  ;;  %4343 = vmatprep.subr.bf16.mxu1 %v4330_v36  ;;  %v4045_v37 = vpop.f32.mrb[76].mxu1 }
 0x427   :  { %4333 = vmatpush3.bf16.msra.mxu0 %v4330_v36  ;;  %4347 = vmatpush3.bf16.msra.mxu1 %v4330_v36  ;;  %v2620_v38 = vpop.f32.mrb[77].mxu1 }
 0x428   :  { %v4334_v39 = vpack.c.bf16 %v4045_v37, %v2620_v38 }
 0x42a   :  { %4335 = vmatprep.subr.bf16.mxu0 %v4334_v39  ;;  %4344 = vmatprep.subr.bf16.mxu1 %v4334_v39  ;;  %v4048_v28 = vpop.f32.mrb[78].mxu1 }
 0x42b   :  { %4337 = vmatpush3.bf16.msra.mxu0 %v4334_v39  ;;  %4348 = vmatpush3.bf16.msra.mxu1 %v4334_v39  ;;  %v2630_v40 = vpop.f32.mrb[79].mxu1 }
 0x42c   :  { %v4338_v41 = vpack.c.bf16 %v4048_v28, %v2630_v40 }
 0x42e   :  { %4339 = vmatprep.subr.bf16.mxu0 %v4338_v41  ;;  %4345 = vmatprep.subr.bf16.mxu1 %v4338_v41 }
 0x42f   :  { %4341 = vmatpush3.bf16.msra.mxu0 %v4338_v41  ;;  %4349 = vmatpush3.bf16.msra.mxu1 %v4338_v41 }
 0x432   :  { %4075 = vmatmul.mubr.msk.f32.vlgmr.msra.gmra.mrb[80].mxu1 %vm59_vm0, %v4970_v0  ;;  %4066 = vmatmul.mubr.msk.f32.vlgmr.msra.gmra.mrb[82].mxu0 %vm59_vm0, %v4931_v54 }
 0x433   :  { %4077 = vmatprep.mubr.msk.f32.mxu1 %vm59_vm0, %v4977_v2  ;;  %4068 = vmatprep.mubr.msk.f32.mxu0 %vm59_vm0, %v4938_v56 }
 0x436   :  { %4078 = vmatmul.mubr.msk.f32.gmra.mrb[82].mxu1 %vm59_vm0, %v4984_v6  ;;  %4069 = vmatmul.mubr.msk.f32.gmra.mrb[84].mxu0 %vm59_vm0, %v4945_v58  ;;  %v4002_v42 = vpop.f32.mrb[68].mxu0 }
 0x437   :  { %4080 = vmatprep.mubr.msk.f32.mxu1 %vm59_vm0, %v4991_v14  ;;  %4071 = vmatprep.mubr.msk.f32.mxu0 %vm59_vm0, %v4952_v59  ;;  %v3235_v43 = vpack.c.bf16 %v4002_v42, %v4002_v42  ;;  %v2361_v44 = vpop.f32.mrb[69].mxu0 }
 0x438   :  { %v3234_v45 = vpack.c.bf16 %v2361_v44, %v2361_v44 }
 0x439   :  { %2488 = vst.msk [vmem:[#allocation5 + $0x154] sm:$0xf] %vm422_vm1, %v3235_v43 }
 0x43a   :  { %4081 = vmatmul.mubr.msk.f32.gmra.mrb[84].mxu1 %vm59_vm0, %v4998_v15  ;;  %4072 = vmatmul.mubr.msk.f32.gmra.mrb[86].mxu0 %vm59_vm0, %v4959_v61  ;;  %2487 = vst.msk [vmem:[#allocation5 + $0x150] sm:$0xf] %vm422_vm1, %v3234_v45  ;;  %v4005_v46 = vpop.f32.mrb[70].mxu0 }
 0x43b   :  { %4083 = vmatprep.mubr.msk.f32.mxu1 %vm59_vm0, %v5005_v16  ;;  %v3237_v47 = vpack.c.bf16 %v4005_v46, %v4005_v46  ;;  %v2371_v48 = vpop.f32.mrb[71].mxu0 }
 0x43c   :  { %v3236_v49 = vpack.c.bf16 %v2371_v48, %v2371_v48 }
 0x43d   :  { %2490 = vst.msk [vmem:[#allocation5 + $0x15c] sm:$0xf] %vm422_vm1, %v3237_v47 }
 0x43e   :  { %4084 = vmatmul.mubr.msk.f32.gmra.mrb[86].mxu1 %vm59_vm0, %v5012_v17  ;;  %2489 = vst.msk [vmem:[#allocation5 + $0x158] sm:$0xf] %vm422_vm1, %v3236_v49  ;;  %v4008_v51 = vpop.f32.mrb[72].mxu0 }
 0x43f   :  { %v3239_v53 = vpack.c.bf16 %v4008_v51, %v4008_v51  ;;  %v2381_v54 = vpop.f32.mrb[73].mxu0 }
 0x440   :  { %v3238_v56 = vpack.c.bf16 %v2381_v54, %v2381_v54 }
 0x441   :  { %2492 = vst.msk [vmem:[#allocation5 + $0x164] sm:$0xf] %vm422_vm1, %v3239_v53 }
 0x442   :  { %2491 = vst.msk [vmem:[#allocation5 + $0x160] sm:$0xf] %vm422_vm1, %v3238_v56  ;;  %v4011_v58 = vpop.f32.mrb[74].mxu0 }
 0x443   :  { %v3241_v59 = vpack.c.bf16 %v4011_v58, %v4011_v58  ;;  %v2391_v61 = vpop.f32.mrb[75].mxu0 }
 0x444   :  { %v3240_v63 = vpack.c.bf16 %v2391_v61, %v2391_v61 }
 0x445   :  { %2494 = vst.msk [vmem:[#allocation5 + $0x16c] sm:$0xf] %vm422_vm1, %v3241_v59 }
 0x446   :  { %2493 = vst.msk [vmem:[#allocation5 + $0x168] sm:$0xf] %vm422_vm1, %v3240_v63  ;;  %v4014_v0 = vpop.f32.mrb[76].mxu0 }
 0x447   :  { %v3243_v2 = vpack.c.bf16 %v4014_v0, %v4014_v0  ;;  %v2401_v6 = vpop.f32.mrb[77].mxu0 }
 0x448   :  { %v3242_v14 = vpack.c.bf16 %v2401_v6, %v2401_v6 }
 0x449   :  { %2496 = vst.msk [vmem:[#allocation5 + $0x174] sm:$0xf] %vm422_vm1, %v3243_v2 }
 0x44a   :  { %2495 = vst.msk [vmem:[#allocation5 + $0x170] sm:$0xf] %vm422_vm1, %v3242_v14  ;;  %v4017_v15 = vpop.f32.mrb[78].mxu0 }
 0x44b   :  { %v3245_v16 = vpack.c.bf16 %v4017_v15, %v4017_v15  ;;  %v2411_v17 = vpop.f32.mrb[79].mxu0 }
 0x44c   :  { %v3244_v18 = vpack.c.bf16 %v2411_v17, %v2411_v17 }
 0x44d   :  { %2498 = vst.msk [vmem:[#allocation5 + $0x17c] sm:$0xf] %vm422_vm1, %v3245_v16 }
 0x44e   :  { %2497 = vst.msk [vmem:[#allocation5 + $0x178] sm:$0xf] %vm422_vm1, %v3244_v18  ;;  %v4020_v19 = vpop.f32.mrb[80].mxu0 }
 0x44f   :  { %v3247_v20 = vpack.c.bf16 %v4020_v19, %v4020_v19  ;;  %v2421_v3 = vpop.f32.mrb[81].mxu0 }
 0x450   :  { %v3246_v5 = vpack.c.bf16 %v2421_v3, %v2421_v3 }
 0x451   :  { %2500 = vst.msk [vmem:[#allocation5 + $0x184] sm:$0xf] %vm422_vm1, %v3247_v20 }
 0x452   :  { %2499 = vst.msk [vmem:[#allocation5 + $0x180] sm:$0xf] %vm422_vm1, %v3246_v5 }
 0x505   :  { %v4076_v9 = vpop.f32.mrb[80].mxu1  ;;  %v4067_v12 = vpop.f32.mrb[82].mxu0 }
 0x506   :  { %v3255_v50 = vpack.c.bf16 %v4076_v9, %v4076_v9  ;;  %v2735_v52 = vpop.f32.mrb[81].mxu1  ;;  %v3249_v55 = vpack.c.bf16 %v4067_v12, %v4067_v12  ;;  %v2705_v57 = vpop.f32.mrb[83].mxu0 }
 0x507   :  { %v3254_v60 = vpack.c.bf16 %v2735_v52, %v2735_v52  ;;  %v3248_v1 = vpack.c.bf16 %v2705_v57, %v2705_v57 }
 0x508   :  { %2838 = vst.msk [vmem:[#allocation5 + $0x1a4] sm:$0xf] %vm422_vm1, %v3255_v50  ;;  %2832 = vst.msk [vmem:[#allocation5 + $0x18c] sm:$0xf] %vm422_vm1, %v3249_v55 }
 0x509   :  { %2837 = vst.msk [vmem:[#allocation5 + $0x1a0] sm:$0xf] %vm422_vm1, %v3254_v60  ;;  %v4079_v4 = vpop.f32.mrb[82].mxu1  ;;  %2831 = vst.msk [vmem:[#allocation5 + $0x188] sm:$0xf] %vm422_vm1, %v3248_v1  ;;  %v4070_v7 = vpop.f32.mrb[84].mxu0 }
 0x50a   :  { %v3257_v8 = vpack.c.bf16 %v4079_v4, %v4079_v4  ;;  %v2745_v10 = vpop.f32.mrb[83].mxu1  ;;  %v3251_v11 = vpack.c.bf16 %v4070_v7, %v4070_v7  ;;  %v2715_v13 = vpop.f32.mrb[85].mxu0 }
 0x50b   :  { %v3256_v21 = vpack.c.bf16 %v2745_v10, %v2745_v10  ;;  %v3250_v22 = vpack.c.bf16 %v2715_v13, %v2715_v13 }
 0x50c   :  { %2840 = vst.msk [vmem:[#allocation5 + $0x1ac] sm:$0xf] %vm422_vm1, %v3257_v8  ;;  %2834 = vst.msk [vmem:[#allocation5 + $0x194] sm:$0xf] %vm422_vm1, %v3251_v11 }
 0x50d   :  { %2839 = vst.msk [vmem:[#allocation5 + $0x1a8] sm:$0xf] %vm422_vm1, %v3256_v21  ;;  %v4082_v23 = vpop.f32.mrb[84].mxu1  ;;  %2833 = vst.msk [vmem:[#allocation5 + $0x190] sm:$0xf] %vm422_vm1, %v3250_v22  ;;  %v4073_v62 = vpop.f32.mrb[86].mxu0 }
 0x50e   :  { %v3259_v24 = vpack.c.bf16 %v4082_v23, %v4082_v23  ;;  %v2755_v25 = vpop.f32.mrb[85].mxu1  ;;  %v3253_v26 = vpack.c.bf16 %v4073_v62, %v4073_v62  ;;  %v2725_v27 = vpop.f32.mrb[87].mxu0 }
 0x50f   :  { %v3258_v29 = vpack.c.bf16 %v2755_v25, %v2755_v25  ;;  %v3252_v30 = vpack.c.bf16 %v2725_v27, %v2725_v27 }
 0x510   :  { %2842 = vst.msk [vmem:[#allocation5 + $0x1b4] sm:$0xf] %vm422_vm1, %v3259_v24  ;;  %2836 = vst.msk [vmem:[#allocation5 + $0x19c] sm:$0xf] %vm422_vm1, %v3253_v26 }
 0x511   :  { %2841 = vst.msk [vmem:[#allocation5 + $0x1b0] sm:$0xf] %vm422_vm1, %v3258_v29  ;;  %v4085_v31 = vpop.f32.mrb[86].mxu1  ;;  %2835 = vst.msk [vmem:[#allocation5 + $0x198] sm:$0xf] %vm422_vm1, %v3252_v30 }
 0x512   :  { %v3261_v32 = vpack.c.bf16 %v4085_v31, %v4085_v31  ;;  %v2765_v33 = vpop.f32.mrb[87].mxu1 }
 0x513   :  { %v3260_v34 = vpack.c.bf16 %v2765_v33, %v2765_v33 }
 0x514   :  { %2844 = vst.msk [vmem:[#allocation5 + $0x1bc] sm:$0xf] %vm422_vm1, %v3261_v32 }
 0x515   :  { %2843 = vst.msk [vmem:[#allocation5 + $0x1b8] sm:$0xf] %vm422_vm1, %v3260_v34 }
 0x516   :  { %4403 = shalt.err (!%p4400_p12)
}
 0x517   :  { %s4404_s15 = scalar_lea.hbm %s5101_s3, 7168 }
 0x518   :  { %p4405_p13 = scmp.ne.s32.totalorder %s5101_s3, %s4404_s15  ;;  %p4408_p0 = scmp.lt.u32.totalorder %s4404_s15, %s5101_s3 }
 0x51a   :  { %p4410_p1 = pnand %p4408_p0, %p4405_p13 }
 0x51c   :  { %4413 = shalt.err (!%p4410_p1)
}
 0x51d   :  { %s4422_s20 = smov 64   ;;  %s4423_s21 = smov 4  }
 0x51e   :  { %2856 = dma.vmem_to_hbm [thread:$0]  %s2851_s12, 7168, %s5101_s3, [#allocation4], %s4422_s20, %s4422_s20, %s4423_s21  }
 0x51f   :  { %4416 = dma.done.wait [#allocation4], 7168  }
 0x520   :  { %4417 = vsyncadd [#allocation4], 4294960128 }
 0x521   :  { %2860 = vsyncpa [#allocation3], 1 }
 0x522   :  { %2861 = vsyncpa [#allocation4], 1 }

</bundles_post_ra>
